<compile_context>
chip_gen: v7x
topology: tpu7x:2x2x1
jax: 0.10.0
libtpu: 0.0.40
codegen_flags: <defaults>
</compile_context>

<pallas_src>
import itertools

import jax
import jax.numpy as jnp
from jax import lax
from jax.experimental import pallas as pl
from jax.experimental.pallas import tpu as pltpu  # noqa: F401  (TPU backend)

# ---------------- configuration ----------------
IMG = 16
PATCH = 4
IN_CHANS = 3
NUM_CLASSES = 10
EMBED_DIM = 32
KEY_DIM = 8
DEPTH = 2
NUM_HEADS = 2
ATTN_RATIO = 2
MLP_RATIO = 2

RES = IMG // PATCH              # 4
N = RES * RES                   # 16 tokens
D = ATTN_RATIO * KEY_DIM        # 16  (per-head value dim)
DH = D * NUM_HEADS              # 32
NH_KD = KEY_DIM * NUM_HEADS     # 16
QKV_H = DH + 2 * NH_KD          # 64
MLP_H = EMBED_DIM * MLP_RATIO   # 64
PATCH_K = IN_CHANS * PATCH * PATCH  # 48
PER_HEAD = 2 * KEY_DIM + D      # 32 (q, k, v columns per head in qkv)
SCALE = KEY_DIM ** (-0.5)


def _hardswish(x):
    # torch.nn.Hardswish: x * relu6(x + 3) / 6
    return x * jnp.clip(x + 3.0, 0.0, 6.0) * (1.0 / 6.0)


# ---------------- fused Pallas kernel ----------------
def levit_fused_kernel(p_ref, wpe_ref, bpe_ref,
                       wq_ref, wk_ref, wv_ref, bq_ref, bk_ref, bv_ref,
                       ab_ref, wproj_ref, bproj_ref,
                       w1_ref, b1_ref, w2_ref, b2_ref,
                       wh_ref, bh_ref, whd_ref, bhd_ref,
                       feat_ref, logits_ref):
    # p_ref:      (B*N, PATCH_K)   flattened patches (token-major, batch folded)
    # wpe/bpe:    (PATCH_K, C), (1, C)
    # wq/wk:      (DEPTH, NH, C, KEY_DIM)   bq/bk: (DEPTH, NH, 1, KEY_DIM)
    # wv:         (DEPTH, NH, C, D)         bv:    (DEPTH, NH, 1, D)
    # ab:         (DEPTH, NH, N, N)         attention biases (pre-gathered)
    # wproj:      (DEPTH, NH, D, C)         bproj: (DEPTH, 1, C)
    # w1/b1:      (DEPTH, C, MLP_H), (DEPTH, 1, MLP_H)
    # w2/b2:      (DEPTH, MLP_H, C), (DEPTH, 1, C)
    # wh/bh, whd/bhd: (C, NUM_CLASSES), (1, NUM_CLASSES)
    # feat_ref:   (B*N, C)    logits_ref: (B, NUM_CLASSES)
    rows = p_ref.shape[0]
    B = rows // N

    # -------- patch embedding (Conv2d(in,out,patch,stride=patch) as matmul) --------
    x = jnp.dot(p_ref[...], wpe_ref[...],
                preferred_element_type=jnp.float32) + bpe_ref[...]        # (B*N, C)

    # -------- transformer blocks (static unroll over depth / heads / batch) --------
    for d in range(DEPTH):
        # ---- Residual(Attention) ----
        y = None
        for h in range(NUM_HEADS):
            # Per-head projections on the full (B*N) row block; weights were
            # pre-split host-side so there is no lane slicing in here.
            q = jnp.dot(x, wq_ref[d, h], preferred_element_type=jnp.float32) + bq_ref[d, h]
            k = jnp.dot(x, wk_ref[d, h], preferred_element_type=jnp.float32) + bk_ref[d, h]
            v = jnp.dot(x, wv_ref[d, h], preferred_element_type=jnp.float32) + bv_ref[d, h]
            ab = ab_ref[d, h]                                             # (N, N)

            ctx_parts = []
            for b in range(B):  # per-sample attention; sublane slices at multiples of 8
                qb = q[b * N:(b + 1) * N]                                 # (N, kd)
                kb = k[b * N:(b + 1) * N]                                 # (N, kd)
                vb = v[b * N:(b + 1) * N]                                 # (N, d)
                # q @ k^T without materializing a transpose: contract last dims.
                s = lax.dot_general(qb, kb, (((1,), (1,)), ((), ())),
                                    preferred_element_type=jnp.float32) * SCALE + ab
                s = s - jnp.max(s, axis=-1, keepdims=True)
                e = jnp.exp(s)
                attn = e * pl.reciprocal(jnp.sum(e, axis=-1, keepdims=True), approx=True)
                ctx_parts.append(jnp.dot(attn, vb, preferred_element_type=jnp.float32))
            ctx = jnp.concatenate(ctx_parts, axis=0)                      # (B*N, d) sublane concat

            # hardswish is elementwise => applying it per-head slice equals
            # applying it to the concatenated head output; per-head proj slices
            # are summed instead of lane-concatenated.
            yh = jnp.dot(_hardswish(ctx), wproj_ref[d, h],
                         preferred_element_type=jnp.float32)              # (B*N, C)
            y = yh if y is None else y + yh
        x = x + y + bproj_ref[d]

        # ---- Residual(Linear -> Hardswish -> Linear) ----
        hmid = _hardswish(jnp.dot(x, w1_ref[d],
                                  preferred_element_type=jnp.float32) + b1_ref[d])
        x = x + jnp.dot(hmid, w2_ref[d],
                        preferred_element_type=jnp.float32) + b2_ref[d]

    # -------- feature output + distillation head (eval mode: averaged) --------
    feat_ref[...] = x
    means = [jnp.mean(x[b * N:(b + 1) * N], axis=0, keepdims=True) for b in range(B)]
    m = jnp.concatenate(means, axis=0)                                    # (B, C)
    logits = (jnp.dot(m, wh_ref[...], preferred_element_type=jnp.float32) + bh_ref[...]
              + jnp.dot(m, whd_ref[...], preferred_element_type=jnp.float32) + bhd_ref[...]) * 0.5
    logits_ref[...] = logits


# ---------------- wrapper ----------------
def levit_forward(x_nchw, kp):
    """Full LeViT forward. x_nchw: (B, Cin, H, W). Returns (logits, feature)."""
    B = x_nchw.shape[0]
    # Patch extraction (glue): (B,Cin,H,W) -> (B*N, Cin*p*p), matching Conv2d
    # weight flatten order (Cin, kh, kw) and row-major patch ordering.
    p = x_nchw.reshape(B, IN_CHANS, RES, PATCH, RES, PATCH)
    p = p.transpose(0, 2, 4, 1, 3, 5).reshape(B * N, PATCH_K)

    # Single fused pallas_call: no grid, everything VMEM-resident (total
    # weights+activations << 1 MiB, far under even v7x's 64 MiB VMEM).
    feat_flat, logits = pl.pallas_call(
        levit_fused_kernel,
        out_shape=(
            jax.ShapeDtypeStruct((B * N, EMBED_DIM), jnp.float32),
            jax.ShapeDtypeStruct((B, NUM_CLASSES), jnp.float32),
        ),
    )(p, kp["wpe"], kp["bpe"],
      kp["WQ"], kp["WK"], kp["WV"], kp["BQ"], kp["BK"], kp["BV"],
      kp["AB"], kp["WPROJ"], kp["BPROJ"],
      kp["W1"], kp["B1"], kp["W2"], kp["B2"],
      kp["wh"], kp["bh"], kp["whd"], kp["bhd"])
    feature = feat_flat.reshape(B, N, EMBED_DIM)   # free host-side reshape
    return logits, feature


# ---------------- parameter construction ----------------
def _attention_bias_table():
    # Same offset-indexing scheme as the PyTorch Attention.__init__
    points = list(itertools.product(range(RES), range(RES)))
    attention_offsets = {}
    idxs = []
    for p1 in points:
        for p2 in points:
            offset = (abs(p1[0] - p2[0]), abs(p1[1] - p2[1]))
            if offset not in attention_offsets:
                attention_offsets[offset] = len(attention_offsets)
            idxs.append(attention_offsets[offset])
    return jnp.array(idxs, dtype=jnp.int32).reshape(N, N), len(attention_offsets)


def init_params(key):
    idxs, n_off = _attention_bias_table()
    keys = jax.random.split(key, 4 + DEPTH * 5 + 2)
    ki = iter(keys)

    def nrm(k, shape):
        return (0.02 * jax.random.normal(k, shape)).astype(jnp.float32)

    params = {
        # conv patch embed (Conv2d(in,out,patch,stride=patch)) as flattened matmul
        "wpe": nrm(next(ki), (PATCH_K, EMBED_DIM)),
        "bpe": nrm(next(ki), (1, EMBED_DIM)),
        "blocks": [],
        "wh": nrm(next(ki), (EMBED_DIM, NUM_CLASSES)),
        "bh": jnp.zeros((1, NUM_CLASSES), jnp.float32),
    }
    params["whd"] = nrm(next(ki), (EMBED_DIM, NUM_CLASSES))
    params["bhd"] = jnp.zeros((1, NUM_CLASSES), jnp.float32)

    for _ in range(DEPTH):
        biases = nrm(next(ki), (NUM_HEADS, n_off))          # attention_biases param
        ab = biases[:, idxs]                                 # (NH, N, N) gathered bias (eval-mode .ab)
        blk = {
            "wqkv": nrm(next(ki), (EMBED_DIM, QKV_H)),
            "bqkv": jnp.zeros((1, QKV_H), jnp.float32),
            "ab": ab,
            "wproj": nrm(next(ki), (DH, EMBED_DIM)),
            "bproj": jnp.zeros((1, EMBED_DIM), jnp.float32),
            "w1": nrm(next(ki), (EMBED_DIM, MLP_H)),
            "b1": jnp.zeros((1, MLP_H), jnp.float32),
            "w2": nrm(next(ki), (MLP_H, EMBED_DIM)),
            "b2": jnp.zeros((1, EMBED_DIM), jnp.float32),
        }
        params["blocks"].append(blk)
    return params


def pack_params(params):
    """Host-side layout plumbing: split qkv / proj weights per head and stack
    everything over depth so the fused kernel never slices along lanes."""
    WQ, WK, WV, BQ, BK, BV = [], [], [], [], [], []
    AB, WPROJ, BPROJ, W1, B1, W2, B2 = [], [], [], [], [], [], []
    for blk in params["blocks"]:
        wqkv, bqkv = blk["wqkv"], blk["bqkv"]
        wq_h, wk_h, wv_h, bq_h, bk_h, bv_h, wp_h = [], [], [], [], [], [], []
        for h in range(NUM_HEADS):
            base = h * PER_HEAD
            wq_h.append(wqkv[:, base:base + KEY_DIM])
            wk_h.append(wqkv[:, base + KEY_DIM:base + 2 * KEY_DIM])
            wv_h.append(wqkv[:, base + 2 * KEY_DIM:base + PER_HEAD])
            bq_h.append(bqkv[:, base:base + KEY_DIM])
            bk_h.append(bqkv[:, base + KEY_DIM:base + 2 * KEY_DIM])
            bv_h.append(bqkv[:, base + 2 * KEY_DIM:base + PER_HEAD])
            wp_h.append(blk["wproj"][h * D:(h + 1) * D, :])
        WQ.append(jnp.stack(wq_h)); WK.append(jnp.stack(wk_h)); WV.append(jnp.stack(wv_h))
        BQ.append(jnp.stack(bq_h)); BK.append(jnp.stack(bk_h)); BV.append(jnp.stack(bv_h))
        AB.append(blk["ab"]); WPROJ.append(jnp.stack(wp_h)); BPROJ.append(blk["bproj"])
        W1.append(blk["w1"]); B1.append(blk["b1"]); W2.append(blk["w2"]); B2.append(blk["b2"])
    return {
        "wpe": params["wpe"], "bpe": params["bpe"],
        "WQ": jnp.stack(WQ), "WK": jnp.stack(WK), "WV": jnp.stack(WV),
        "BQ": jnp.stack(BQ), "BK": jnp.stack(BK), "BV": jnp.stack(BV),
        "AB": jnp.stack(AB), "WPROJ": jnp.stack(WPROJ), "BPROJ": jnp.stack(BPROJ),
        "W1": jnp.stack(W1), "B1": jnp.stack(B1),
        "W2": jnp.stack(W2), "B2": jnp.stack(B2),
        "wh": params["wh"], "bh": params["bh"],
        "whd": params["whd"], "bhd": params["bhd"],
    }


# ---------------- pure-JAX reference (for verification) ----------------
def ref_forward(x_nchw, params):
    B = x_nchw.shape[0]
    p = x_nchw.reshape(B, IN_CHANS, RES, PATCH, RES, PATCH)
    p = p.transpose(0, 2, 4, 1, 3, 5).reshape(B, N, PATCH_K)
    x = p @ params["wpe"] + params["bpe"]
    for d in range(DEPTH):
        blk = params["blocks"][d]
        qkv = (x @ blk["wqkv"] + blk["bqkv"]).reshape(B, N, NUM_HEADS, 2 * KEY_DIM + D)
        q = qkv[..., :KEY_DIM].transpose(0, 2, 1, 3)
        k = qkv[..., KEY_DIM:2 * KEY_DIM].transpose(0, 2, 1, 3)
        v = qkv[..., 2 * KEY_DIM:].transpose(0, 2, 1, 3)
        attn = jnp.einsum("bhnd,bhmd->bhnm", q, k) * SCALE + blk["ab"][None]
        attn = jax.nn.softmax(attn, axis=-1)
        y = jnp.einsum("bhnm,bhmd->bhnd", attn, v).transpose(0, 2, 1, 3).reshape(B, N, DH)
        y = _hardswish(y) @ blk["wproj"] + blk["bproj"]
        x = x + y
        h = _hardswish(x @ blk["w1"] + blk["b1"])
        x = x + h @ blk["w2"] + blk["b2"]
    feature = x
    m = feature.mean(axis=1)
    logits = ((m @ params["wh"] + params["bh"]) + (m @ params["whd"] + params["bhd"])) * 0.5
    return logits, feature


if __name__ == "__main__":
    key = jax.random.PRNGKey(0)
    kx, kparam = jax.random.split(key)
    x = jax.random.normal(kx, (2, IN_CHANS, IMG, IMG), dtype=jnp.float32)
    params = init_params(kparam)
    packed = pack_params(params)

    fwd = jax.jit(levit_forward)
    logits, feature = fwd(x, packed)
    logits = jax.block_until_ready(logits)
    feature = jax.block_until_ready(feature)

    ref_logits, ref_feature = ref_forward(x, params)
    assert jnp.allclose(logits, ref_logits, atol=1e-3, rtol=1e-3), "logits mismatch"
    assert jnp.allclose(feature, ref_feature, atol=1e-3, rtol=1e-3), "feature mismatch"

    print("KERNEL_OK")
</pallas_src>

<mosaic_0001>
module attributes {stable_mosaic.version = 11 : i64} {
  func.func @levit_fused_kernel(%arg0: memref<32x48xf32, #tpu.memory_space<vmem>>, %arg1: memref<48x32xf32, #tpu.memory_space<vmem>>, %arg2: memref<1x32xf32, #tpu.memory_space<vmem>>, %arg3: memref<2x2x32x8xf32, #tpu.memory_space<vmem>>, %arg4: memref<2x2x32x8xf32, #tpu.memory_space<vmem>>, %arg5: memref<2x2x32x16xf32, #tpu.memory_space<vmem>>, %arg6: memref<2x2x1x8xf32, #tpu.memory_space<vmem>>, %arg7: memref<2x2x1x8xf32, #tpu.memory_space<vmem>>, %arg8: memref<2x2x1x16xf32, #tpu.memory_space<vmem>>, %arg9: memref<2x2x16x16xf32, #tpu.memory_space<vmem>>, %arg10: memref<2x2x16x32xf32, #tpu.memory_space<vmem>>, %arg11: memref<2x1x32xf32, #tpu.memory_space<vmem>>, %arg12: memref<2x32x64xf32, #tpu.memory_space<vmem>>, %arg13: memref<2x1x64xf32, #tpu.memory_space<vmem>>, %arg14: memref<2x64x32xf32, #tpu.memory_space<vmem>>, %arg15: memref<2x1x32xf32, #tpu.memory_space<vmem>>, %arg16: memref<32x10xf32, #tpu.memory_space<vmem>>, %arg17: memref<1x10xf32, #tpu.memory_space<vmem>>, %arg18: memref<32x10xf32, #tpu.memory_space<vmem>>, %arg19: memref<1x10xf32, #tpu.memory_space<vmem>>, %arg20: memref<32x32xf32, #tpu.memory_space<vmem>>, %arg21: memref<2x10xf32, #tpu.memory_space<vmem>>) attributes {dimension_semantics = [], scalar_prefetch = 0 : i64, scratch_operands = 0 : i64, tpu.core_type = #tpu.core_type<tc>} {
    %c0 = arith.constant 0 : index
    %c0_0 = arith.constant 0 : index
    %0 = vector.load %arg0[%c0, %c0_0] : memref<32x48xf32, #tpu.memory_space<vmem>>, vector<32x48xf32>
    %c0_1 = arith.constant 0 : index
    %c0_2 = arith.constant 0 : index
    %1 = vector.load %arg1[%c0_1, %c0_2] : memref<48x32xf32, #tpu.memory_space<vmem>>, vector<48x32xf32>
    %cst = arith.constant dense<0.000000e+00> : vector<32x32xf32>
    %2 = tpu.matmul %0, %1, %cst {dimension_numbers = #tpu.dot_dimension_numbers<[1], [0], [0], [1], [0, 0, 1, 1], [], []>} : vector<32x48xf32>, vector<48x32xf32>, vector<32x32xf32> -> vector<32x32xf32>
    %c0_3 = arith.constant 0 : index
    %c0_4 = arith.constant 0 : index
    %3 = vector.load %arg2[%c0_3, %c0_4] : memref<1x32xf32, #tpu.memory_space<vmem>>, vector<1x32xf32>
    %4 = vector.broadcast %3 : vector<1x32xf32> to vector<32x32xf32>
    %5 = arith.addf %2, %4 : vector<32x32xf32>
    %c0_5 = arith.constant 0 : index
    %c0_6 = arith.constant 0 : index
    %c0_7 = arith.constant 0 : index
    %c0_8 = arith.constant 0 : index
    %6 = vector.load %arg3[%c0_5, %c0_6, %c0_7, %c0_8] : memref<2x2x32x8xf32, #tpu.memory_space<vmem>>, vector<1x1x32x8xf32>
    %7 = vector.shape_cast %6 : vector<1x1x32x8xf32> to vector<32x8xf32>
    %cst_9 = arith.constant dense<0.000000e+00> : vector<32x8xf32>
    %8 = tpu.matmul %5, %7, %cst_9 {dimension_numbers = #tpu.dot_dimension_numbers<[1], [0], [0], [1], [0, 0, 1, 1], [], []>} : vector<32x32xf32>, vector<32x8xf32>, vector<32x8xf32> -> vector<32x8xf32>
    %c0_10 = arith.constant 0 : index
    %c0_11 = arith.constant 0 : index
    %c0_12 = arith.constant 0 : index
    %c0_13 = arith.constant 0 : index
    %9 = vector.load %arg6[%c0_10, %c0_11, %c0_12, %c0_13] : memref<2x2x1x8xf32, #tpu.memory_space<vmem>>, vector<1x1x1x8xf32>
    %10 = vector.shape_cast %9 : vector<1x1x1x8xf32> to vector<1x8xf32>
    %11 = vector.broadcast %10 : vector<1x8xf32> to vector<32x8xf32>
    %12 = arith.addf %8, %11 : vector<32x8xf32>
    %c0_14 = arith.constant 0 : index
    %c0_15 = arith.constant 0 : index
    %c0_16 = arith.constant 0 : index
    %c0_17 = arith.constant 0 : index
    %13 = vector.load %arg4[%c0_14, %c0_15, %c0_16, %c0_17] : memref<2x2x32x8xf32, #tpu.memory_space<vmem>>, vector<1x1x32x8xf32>
    %14 = vector.shape_cast %13 : vector<1x1x32x8xf32> to vector<32x8xf32>
    %cst_18 = arith.constant dense<0.000000e+00> : vector<32x8xf32>
    %15 = tpu.matmul %5, %14, %cst_18 {dimension_numbers = #tpu.dot_dimension_numbers<[1], [0], [0], [1], [0, 0, 1, 1], [], []>} : vector<32x32xf32>, vector<32x8xf32>, vector<32x8xf32> -> vector<32x8xf32>
    %c0_19 = arith.constant 0 : index
    %c0_20 = arith.constant 0 : index
    %c0_21 = arith.constant 0 : index
    %c0_22 = arith.constant 0 : index
    %16 = vector.load %arg7[%c0_19, %c0_20, %c0_21, %c0_22] : memref<2x2x1x8xf32, #tpu.memory_space<vmem>>, vector<1x1x1x8xf32>
    %17 = vector.shape_cast %16 : vector<1x1x1x8xf32> to vector<1x8xf32>
    %18 = vector.broadcast %17 : vector<1x8xf32> to vector<32x8xf32>
    %19 = arith.addf %15, %18 : vector<32x8xf32>
    %c0_23 = arith.constant 0 : index
    %c0_24 = arith.constant 0 : index
    %c0_25 = arith.constant 0 : index
    %c0_26 = arith.constant 0 : index
    %20 = vector.load %arg5[%c0_23, %c0_24, %c0_25, %c0_26] : memref<2x2x32x16xf32, #tpu.memory_space<vmem>>, vector<1x1x32x16xf32>
    %21 = vector.shape_cast %20 : vector<1x1x32x16xf32> to vector<32x16xf32>
    %cst_27 = arith.constant dense<0.000000e+00> : vector<32x16xf32>
    %22 = tpu.matmul %5, %21, %cst_27 {dimension_numbers = #tpu.dot_dimension_numbers<[1], [0], [0], [1], [0, 0, 1, 1], [], []>} : vector<32x32xf32>, vector<32x16xf32>, vector<32x16xf32> -> vector<32x16xf32>
    %c0_28 = arith.constant 0 : index
    %c0_29 = arith.constant 0 : index
    %c0_30 = arith.constant 0 : index
    %c0_31 = arith.constant 0 : index
    %23 = vector.load %arg8[%c0_28, %c0_29, %c0_30, %c0_31] : memref<2x2x1x16xf32, #tpu.memory_space<vmem>>, vector<1x1x1x16xf32>
    %24 = vector.shape_cast %23 : vector<1x1x1x16xf32> to vector<1x16xf32>
    %25 = vector.broadcast %24 : vector<1x16xf32> to vector<32x16xf32>
    %26 = arith.addf %22, %25 : vector<32x16xf32>
    %c0_32 = arith.constant 0 : index
    %c0_33 = arith.constant 0 : index
    %c0_34 = arith.constant 0 : index
    %c0_35 = arith.constant 0 : index
    %27 = vector.load %arg9[%c0_32, %c0_33, %c0_34, %c0_35] : memref<2x2x16x16xf32, #tpu.memory_space<vmem>>, vector<1x1x16x16xf32>
    %28 = vector.shape_cast %27 : vector<1x1x16x16xf32> to vector<16x16xf32>
    %29 = vector.extract_strided_slice %12 {offsets = [0, 0], sizes = [16, 8], strides = [1, 1]} : vector<32x8xf32> to vector<16x8xf32>
    %30 = vector.extract_strided_slice %19 {offsets = [0, 0], sizes = [16, 8], strides = [1, 1]} : vector<32x8xf32> to vector<16x8xf32>
    %31 = vector.extract_strided_slice %26 {offsets = [0, 0], sizes = [16, 16], strides = [1, 1]} : vector<32x16xf32> to vector<16x16xf32>
    %cst_36 = arith.constant dense<0.000000e+00> : vector<16x16xf32>
    %32 = tpu.matmul %29, %30, %cst_36 {dimension_numbers = #tpu.dot_dimension_numbers<[1], [1], [0], [0], [0, 0, 1, 0], [], []>} : vector<16x8xf32>, vector<16x8xf32>, vector<16x16xf32> -> vector<16x16xf32>
    %cst_37 = arith.constant 0.353553385 : f32
    %33 = vector.broadcast %cst_37 : f32 to vector<16x16xf32>
    %34 = arith.mulf %32, %33 : vector<16x16xf32>
    %35 = arith.addf %34, %28 : vector<16x16xf32>
    %cst_38 = arith.constant dense<0xFF800000> : vector<16xf32>
    %36 = vector.multi_reduction <maximumf>, %35, %cst_38 [1] : vector<16x16xf32> to vector<16xf32>
    %37 = vector.shape_cast %36 : vector<16xf32> to vector<16x1xf32>
    %38 = vector.broadcast %37 : vector<16x1xf32> to vector<16x16xf32>
    %39 = arith.subf %35, %38 : vector<16x16xf32>
    %40 = math.exp %39 : vector<16x16xf32>
    %cst_39 = arith.constant dense<0.000000e+00> : vector<16xf32>
    %41 = vector.multi_reduction <add>, %40, %cst_39 [1] : vector<16x16xf32> to vector<16xf32>
    %42 = vector.shape_cast %41 : vector<16xf32> to vector<16x1xf32>
    %43 = tpu.reciprocal %42 {approx = true} : vector<16x1xf32> -> vector<16x1xf32>
    %44 = vector.broadcast %43 : vector<16x1xf32> to vector<16x16xf32>
    %45 = arith.mulf %40, %44 : vector<16x16xf32>
    %cst_40 = arith.constant dense<0.000000e+00> : vector<16x16xf32>
    %46 = tpu.matmul %45, %31, %cst_40 {dimension_numbers = #tpu.dot_dimension_numbers<[1], [0], [0], [1], [0, 0, 1, 1], [], []>} : vector<16x16xf32>, vector<16x16xf32>, vector<16x16xf32> -> vector<16x16xf32>
    %47 = vector.extract_strided_slice %12 {offsets = [16, 0], sizes = [16, 8], strides = [1, 1]} : vector<32x8xf32> to vector<16x8xf32>
    %48 = vector.extract_strided_slice %19 {offsets = [16, 0], sizes = [16, 8], strides = [1, 1]} : vector<32x8xf32> to vector<16x8xf32>
    %49 = vector.extract_strided_slice %26 {offsets = [16, 0], sizes = [16, 16], strides = [1, 1]} : vector<32x16xf32> to vector<16x16xf32>
    %cst_41 = arith.constant dense<0.000000e+00> : vector<16x16xf32>
    %50 = tpu.matmul %47, %48, %cst_41 {dimension_numbers = #tpu.dot_dimension_numbers<[1], [1], [0], [0], [0, 0, 1, 0], [], []>} : vector<16x8xf32>, vector<16x8xf32>, vector<16x16xf32> -> vector<16x16xf32>
    %cst_42 = arith.constant 0.353553385 : f32
    %51 = vector.broadcast %cst_42 : f32 to vector<16x16xf32>
    %52 = arith.mulf %50, %51 : vector<16x16xf32>
    %53 = arith.addf %52, %28 : vector<16x16xf32>
    %cst_43 = arith.constant dense<0xFF800000> : vector<16xf32>
    %54 = vector.multi_reduction <maximumf>, %53, %cst_43 [1] : vector<16x16xf32> to vector<16xf32>
    %55 = vector.shape_cast %54 : vector<16xf32> to vector<16x1xf32>
    %56 = vector.broadcast %55 : vector<16x1xf32> to vector<16x16xf32>
    %57 = arith.subf %53, %56 : vector<16x16xf32>
    %58 = math.exp %57 : vector<16x16xf32>
    %cst_44 = arith.constant dense<0.000000e+00> : vector<16xf32>
    %59 = vector.multi_reduction <add>, %58, %cst_44 [1] : vector<16x16xf32> to vector<16xf32>
    %60 = vector.shape_cast %59 : vector<16xf32> to vector<16x1xf32>
    %61 = tpu.reciprocal %60 {approx = true} : vector<16x1xf32> -> vector<16x1xf32>
    %62 = vector.broadcast %61 : vector<16x1xf32> to vector<16x16xf32>
    %63 = arith.mulf %58, %62 : vector<16x16xf32>
    %cst_45 = arith.constant dense<0.000000e+00> : vector<16x16xf32>
    %64 = tpu.matmul %63, %49, %cst_45 {dimension_numbers = #tpu.dot_dimension_numbers<[1], [0], [0], [1], [0, 0, 1, 1], [], []>} : vector<16x16xf32>, vector<16x16xf32>, vector<16x16xf32> -> vector<16x16xf32>
    %65 = tpu.concatenate %46, %64 in 0 : vector<16x16xf32>, vector<16x16xf32> -> vector<32x16xf32>
    %cst_46 = arith.constant 3.000000e+00 : f32
    %66 = vector.broadcast %cst_46 : f32 to vector<32x16xf32>
    %67 = arith.addf %65, %66 : vector<32x16xf32>
    %cst_47 = arith.constant 0.000000e+00 : f32
    %cst_48 = arith.constant 6.000000e+00 : f32
    %68 = vector.broadcast %cst_47 : f32 to vector<32x16xf32>
    %69 = arith.maximumf %68, %67 : vector<32x16xf32>
    %70 = vector.broadcast %cst_48 : f32 to vector<32x16xf32>
    %71 = arith.minimumf %70, %69 : vector<32x16xf32>
    %72 = arith.mulf %65, %71 : vector<32x16xf32>
    %cst_49 = arith.constant 0.166666672 : f32
    %73 = vector.broadcast %cst_49 : f32 to vector<32x16xf32>
    %74 = arith.mulf %72, %73 : vector<32x16xf32>
    %c0_50 = arith.constant 0 : index
    %c0_51 = arith.constant 0 : index
    %c0_52 = arith.constant 0 : index
    %c0_53 = arith.constant 0 : index
    %75 = vector.load %arg10[%c0_50, %c0_51, %c0_52, %c0_53] : memref<2x2x16x32xf32, #tpu.memory_space<vmem>>, vector<1x1x16x32xf32>
    %76 = vector.shape_cast %75 : vector<1x1x16x32xf32> to vector<16x32xf32>
    %cst_54 = arith.constant dense<0.000000e+00> : vector<32x32xf32>
    %77 = tpu.matmul %74, %76, %cst_54 {dimension_numbers = #tpu.dot_dimension_numbers<[1], [0], [0], [1], [0, 0, 1, 1], [], []>} : vector<32x16xf32>, vector<16x32xf32>, vector<32x32xf32> -> vector<32x32xf32>
    %c0_55 = arith.constant 0 : index
    %c1 = arith.constant 1 : index
    %c0_56 = arith.constant 0 : index
    %c0_57 = arith.constant 0 : index
    %78 = vector.load %arg3[%c0_55, %c1, %c0_56, %c0_57] : memref<2x2x32x8xf32, #tpu.memory_space<vmem>>, vector<1x1x32x8xf32>
    %79 = vector.shape_cast %78 : vector<1x1x32x8xf32> to vector<32x8xf32>
    %cst_58 = arith.constant dense<0.000000e+00> : vector<32x8xf32>
    %80 = tpu.matmul %5, %79, %cst_58 {dimension_numbers = #tpu.dot_dimension_numbers<[1], [0], [0], [1], [0, 0, 1, 1], [], []>} : vector<32x32xf32>, vector<32x8xf32>, vector<32x8xf32> -> vector<32x8xf32>
    %c0_59 = arith.constant 0 : index
    %c1_60 = arith.constant 1 : index
    %c0_61 = arith.constant 0 : index
    %c0_62 = arith.constant 0 : index
    %81 = vector.load %arg6[%c0_59, %c1_60, %c0_61, %c0_62] : memref<2x2x1x8xf32, #tpu.memory_space<vmem>>, vector<1x1x1x8xf32>
    %82 = vector.shape_cast %81 : vector<1x1x1x8xf32> to vector<1x8xf32>
    %83 = vector.broadcast %82 : vector<1x8xf32> to vector<32x8xf32>
    %84 = arith.addf %80, %83 : vector<32x8xf32>
    %c0_63 = arith.constant 0 : index
    %c1_64 = arith.constant 1 : index
    %c0_65 = arith.constant 0 : index
    %c0_66 = arith.constant 0 : index
    %85 = vector.load %arg4[%c0_63, %c1_64, %c0_65, %c0_66] : memref<2x2x32x8xf32, #tpu.memory_space<vmem>>, vector<1x1x32x8xf32>
    %86 = vector.shape_cast %85 : vector<1x1x32x8xf32> to vector<32x8xf32>
    %cst_67 = arith.constant dense<0.000000e+00> : vector<32x8xf32>
    %87 = tpu.matmul %5, %86, %cst_67 {dimension_numbers = #tpu.dot_dimension_numbers<[1], [0], [0], [1], [0, 0, 1, 1], [], []>} : vector<32x32xf32>, vector<32x8xf32>, vector<32x8xf32> -> vector<32x8xf32>
    %c0_68 = arith.constant 0 : index
    %c1_69 = arith.constant 1 : index
    %c0_70 = arith.constant 0 : index
    %c0_71 = arith.constant 0 : index
    %88 = vector.load %arg7[%c0_68, %c1_69, %c0_70, %c0_71] : memref<2x2x1x8xf32, #tpu.memory_space<vmem>>, vector<1x1x1x8xf32>
    %89 = vector.shape_cast %88 : vector<1x1x1x8xf32> to vector<1x8xf32>
    %90 = vector.broadcast %89 : vector<1x8xf32> to vector<32x8xf32>
    %91 = arith.addf %87, %90 : vector<32x8xf32>
    %c0_72 = arith.constant 0 : index
    %c1_73 = arith.constant 1 : index
    %c0_74 = arith.constant 0 : index
    %c0_75 = arith.constant 0 : index
    %92 = vector.load %arg5[%c0_72, %c1_73, %c0_74, %c0_75] : memref<2x2x32x16xf32, #tpu.memory_space<vmem>>, vector<1x1x32x16xf32>
    %93 = vector.shape_cast %92 : vector<1x1x32x16xf32> to vector<32x16xf32>
    %cst_76 = arith.constant dense<0.000000e+00> : vector<32x16xf32>
    %94 = tpu.matmul %5, %93, %cst_76 {dimension_numbers = #tpu.dot_dimension_numbers<[1], [0], [0], [1], [0, 0, 1, 1], [], []>} : vector<32x32xf32>, vector<32x16xf32>, vector<32x16xf32> -> vector<32x16xf32>
    %c0_77 = arith.constant 0 : index
    %c1_78 = arith.constant 1 : index
    %c0_79 = arith.constant 0 : index
    %c0_80 = arith.constant 0 : index
    %95 = vector.load %arg8[%c0_77, %c1_78, %c0_79, %c0_80] : memref<2x2x1x16xf32, #tpu.memory_space<vmem>>, vector<1x1x1x16xf32>
    %96 = vector.shape_cast %95 : vector<1x1x1x16xf32> to vector<1x16xf32>
    %97 = vector.broadcast %96 : vector<1x16xf32> to vector<32x16xf32>
    %98 = arith.addf %94, %97 : vector<32x16xf32>
    %c0_81 = arith.constant 0 : index
    %c1_82 = arith.constant 1 : index
    %c0_83 = arith.constant 0 : index
    %c0_84 = arith.constant 0 : index
    %99 = vector.load %arg9[%c0_81, %c1_82, %c0_83, %c0_84] : memref<2x2x16x16xf32, #tpu.memory_space<vmem>>, vector<1x1x16x16xf32>
    %100 = vector.shape_cast %99 : vector<1x1x16x16xf32> to vector<16x16xf32>
    %101 = vector.extract_strided_slice %84 {offsets = [0, 0], sizes = [16, 8], strides = [1, 1]} : vector<32x8xf32> to vector<16x8xf32>
    %102 = vector.extract_strided_slice %91 {offsets = [0, 0], sizes = [16, 8], strides = [1, 1]} : vector<32x8xf32> to vector<16x8xf32>
    %103 = vector.extract_strided_slice %98 {offsets = [0, 0], sizes = [16, 16], strides = [1, 1]} : vector<32x16xf32> to vector<16x16xf32>
    %cst_85 = arith.constant dense<0.000000e+00> : vector<16x16xf32>
    %104 = tpu.matmul %101, %102, %cst_85 {dimension_numbers = #tpu.dot_dimension_numbers<[1], [1], [0], [0], [0, 0, 1, 0], [], []>} : vector<16x8xf32>, vector<16x8xf32>, vector<16x16xf32> -> vector<16x16xf32>
    %cst_86 = arith.constant 0.353553385 : f32
    %105 = vector.broadcast %cst_86 : f32 to vector<16x16xf32>
    %106 = arith.mulf %104, %105 : vector<16x16xf32>
    %107 = arith.addf %106, %100 : vector<16x16xf32>
    %cst_87 = arith.constant dense<0xFF800000> : vector<16xf32>
    %108 = vector.multi_reduction <maximumf>, %107, %cst_87 [1] : vector<16x16xf32> to vector<16xf32>
    %109 = vector.shape_cast %108 : vector<16xf32> to vector<16x1xf32>
    %110 = vector.broadcast %109 : vector<16x1xf32> to vector<16x16xf32>
    %111 = arith.subf %107, %110 : vector<16x16xf32>
    %112 = math.exp %111 : vector<16x16xf32>
    %cst_88 = arith.constant dense<0.000000e+00> : vector<16xf32>
    %113 = vector.multi_reduction <add>, %112, %cst_88 [1] : vector<16x16xf32> to vector<16xf32>
    %114 = vector.shape_cast %113 : vector<16xf32> to vector<16x1xf32>
    %115 = tpu.reciprocal %114 {approx = true} : vector<16x1xf32> -> vector<16x1xf32>
    %116 = vector.broadcast %115 : vector<16x1xf32> to vector<16x16xf32>
    %117 = arith.mulf %112, %116 : vector<16x16xf32>
    %cst_89 = arith.constant dense<0.000000e+00> : vector<16x16xf32>
    %118 = tpu.matmul %117, %103, %cst_89 {dimension_numbers = #tpu.dot_dimension_numbers<[1], [0], [0], [1], [0, 0, 1, 1], [], []>} : vector<16x16xf32>, vector<16x16xf32>, vector<16x16xf32> -> vector<16x16xf32>
    %119 = vector.extract_strided_slice %84 {offsets = [16, 0], sizes = [16, 8], strides = [1, 1]} : vector<32x8xf32> to vector<16x8xf32>
    %120 = vector.extract_strided_slice %91 {offsets = [16, 0], sizes = [16, 8], strides = [1, 1]} : vector<32x8xf32> to vector<16x8xf32>
    %121 = vector.extract_strided_slice %98 {offsets = [16, 0], sizes = [16, 16], strides = [1, 1]} : vector<32x16xf32> to vector<16x16xf32>
    %cst_90 = arith.constant dense<0.000000e+00> : vector<16x16xf32>
    %122 = tpu.matmul %119, %120, %cst_90 {dimension_numbers = #tpu.dot_dimension_numbers<[1], [1], [0], [0], [0, 0, 1, 0], [], []>} : vector<16x8xf32>, vector<16x8xf32>, vector<16x16xf32> -> vector<16x16xf32>
    %cst_91 = arith.constant 0.353553385 : f32
    %123 = vector.broadcast %cst_91 : f32 to vector<16x16xf32>
    %124 = arith.mulf %122, %123 : vector<16x16xf32>
    %125 = arith.addf %124, %100 : vector<16x16xf32>
    %cst_92 = arith.constant dense<0xFF800000> : vector<16xf32>
    %126 = vector.multi_reduction <maximumf>, %125, %cst_92 [1] : vector<16x16xf32> to vector<16xf32>
    %127 = vector.shape_cast %126 : vector<16xf32> to vector<16x1xf32>
    %128 = vector.broadcast %127 : vector<16x1xf32> to vector<16x16xf32>
    %129 = arith.subf %125, %128 : vector<16x16xf32>
    %130 = math.exp %129 : vector<16x16xf32>
    %cst_93 = arith.constant dense<0.000000e+00> : vector<16xf32>
    %131 = vector.multi_reduction <add>, %130, %cst_93 [1] : vector<16x16xf32> to vector<16xf32>
    %132 = vector.shape_cast %131 : vector<16xf32> to vector<16x1xf32>
    %133 = tpu.reciprocal %132 {approx = true} : vector<16x1xf32> -> vector<16x1xf32>
    %134 = vector.broadcast %133 : vector<16x1xf32> to vector<16x16xf32>
    %135 = arith.mulf %130, %134 : vector<16x16xf32>
    %cst_94 = arith.constant dense<0.000000e+00> : vector<16x16xf32>
    %136 = tpu.matmul %135, %121, %cst_94 {dimension_numbers = #tpu.dot_dimension_numbers<[1], [0], [0], [1], [0, 0, 1, 1], [], []>} : vector<16x16xf32>, vector<16x16xf32>, vector<16x16xf32> -> vector<16x16xf32>
    %137 = tpu.concatenate %118, %136 in 0 : vector<16x16xf32>, vector<16x16xf32> -> vector<32x16xf32>
    %cst_95 = arith.constant 3.000000e+00 : f32
    %138 = vector.broadcast %cst_95 : f32 to vector<32x16xf32>
    %139 = arith.addf %137, %138 : vector<32x16xf32>
    %cst_96 = arith.constant 0.000000e+00 : f32
    %cst_97 = arith.constant 6.000000e+00 : f32
    %140 = vector.broadcast %cst_96 : f32 to vector<32x16xf32>
    %141 = arith.maximumf %140, %139 : vector<32x16xf32>
    %142 = vector.broadcast %cst_97 : f32 to vector<32x16xf32>
    %143 = arith.minimumf %142, %141 : vector<32x16xf32>
    %144 = arith.mulf %137, %143 : vector<32x16xf32>
    %cst_98 = arith.constant 0.166666672 : f32
    %145 = vector.broadcast %cst_98 : f32 to vector<32x16xf32>
    %146 = arith.mulf %144, %145 : vector<32x16xf32>
    %c0_99 = arith.constant 0 : index
    %c1_100 = arith.constant 1 : index
    %c0_101 = arith.constant 0 : index
    %c0_102 = arith.constant 0 : index
    %147 = vector.load %arg10[%c0_99, %c1_100, %c0_101, %c0_102] : memref<2x2x16x32xf32, #tpu.memory_space<vmem>>, vector<1x1x16x32xf32>
    %148 = vector.shape_cast %147 : vector<1x1x16x32xf32> to vector<16x32xf32>
    %cst_103 = arith.constant dense<0.000000e+00> : vector<32x32xf32>
    %149 = tpu.matmul %146, %148, %cst_103 {dimension_numbers = #tpu.dot_dimension_numbers<[1], [0], [0], [1], [0, 0, 1, 1], [], []>} : vector<32x16xf32>, vector<16x32xf32>, vector<32x32xf32> -> vector<32x32xf32>
    %150 = arith.addf %77, %149 : vector<32x32xf32>
    %151 = arith.addf %5, %150 : vector<32x32xf32>
    %c0_104 = arith.constant 0 : index
    %c0_105 = arith.constant 0 : index
    %c0_106 = arith.constant 0 : index
    %152 = vector.load %arg11[%c0_104, %c0_105, %c0_106] : memref<2x1x32xf32, #tpu.memory_space<vmem>>, vector<1x1x32xf32>
    %153 = vector.shape_cast %152 : vector<1x1x32xf32> to vector<1x32xf32>
    %154 = vector.broadcast %153 : vector<1x32xf32> to vector<32x32xf32>
    %155 = arith.addf %151, %154 : vector<32x32xf32>
    %c0_107 = arith.constant 0 : index
    %c0_108 = arith.constant 0 : index
    %c0_109 = arith.constant 0 : index
    %156 = vector.load %arg12[%c0_107, %c0_108, %c0_109] : memref<2x32x64xf32, #tpu.memory_space<vmem>>, vector<1x32x64xf32>
    %157 = vector.shape_cast %156 : vector<1x32x64xf32> to vector<32x64xf32>
    %cst_110 = arith.constant dense<0.000000e+00> : vector<32x64xf32>
    %158 = tpu.matmul %155, %157, %cst_110 {dimension_numbers = #tpu.dot_dimension_numbers<[1], [0], [0], [1], [0, 0, 1, 1], [], []>} : vector<32x32xf32>, vector<32x64xf32>, vector<32x64xf32> -> vector<32x64xf32>
    %c0_111 = arith.constant 0 : index
    %c0_112 = arith.constant 0 : index
    %c0_113 = arith.constant 0 : index
    %159 = vector.load %arg13[%c0_111, %c0_112, %c0_113] : memref<2x1x64xf32, #tpu.memory_space<vmem>>, vector<1x1x64xf32>
    %160 = vector.shape_cast %159 : vector<1x1x64xf32> to vector<1x64xf32>
    %161 = vector.broadcast %160 : vector<1x64xf32> to vector<32x64xf32>
    %162 = arith.addf %158, %161 : vector<32x64xf32>
    %cst_114 = arith.constant 3.000000e+00 : f32
    %163 = vector.broadcast %cst_114 : f32 to vector<32x64xf32>
    %164 = arith.addf %162, %163 : vector<32x64xf32>
    %cst_115 = arith.constant 0.000000e+00 : f32
    %cst_116 = arith.constant 6.000000e+00 : f32
    %165 = vector.broadcast %cst_115 : f32 to vector<32x64xf32>
    %166 = arith.maximumf %165, %164 : vector<32x64xf32>
    %167 = vector.broadcast %cst_116 : f32 to vector<32x64xf32>
    %168 = arith.minimumf %167, %166 : vector<32x64xf32>
    %169 = arith.mulf %162, %168 : vector<32x64xf32>
    %cst_117 = arith.constant 0.166666672 : f32
    %170 = vector.broadcast %cst_117 : f32 to vector<32x64xf32>
    %171 = arith.mulf %169, %170 : vector<32x64xf32>
    %c0_118 = arith.constant 0 : index
    %c0_119 = arith.constant 0 : index
    %c0_120 = arith.constant 0 : index
    %172 = vector.load %arg14[%c0_118, %c0_119, %c0_120] : memref<2x64x32xf32, #tpu.memory_space<vmem>>, vector<1x64x32xf32>
    %173 = vector.shape_cast %172 : vector<1x64x32xf32> to vector<64x32xf32>
    %cst_121 = arith.constant dense<0.000000e+00> : vector<32x32xf32>
    %174 = tpu.matmul %171, %173, %cst_121 {dimension_numbers = #tpu.dot_dimension_numbers<[1], [0], [0], [1], [0, 0, 1, 1], [], []>} : vector<32x64xf32>, vector<64x32xf32>, vector<32x32xf32> -> vector<32x32xf32>
    %175 = arith.addf %155, %174 : vector<32x32xf32>
    %c0_122 = arith.constant 0 : index
    %c0_123 = arith.constant 0 : index
    %c0_124 = arith.constant 0 : index
    %176 = vector.load %arg15[%c0_122, %c0_123, %c0_124] : memref<2x1x32xf32, #tpu.memory_space<vmem>>, vector<1x1x32xf32>
    %177 = vector.shape_cast %176 : vector<1x1x32xf32> to vector<1x32xf32>
    %178 = vector.broadcast %177 : vector<1x32xf32> to vector<32x32xf32>
    %179 = arith.addf %175, %178 : vector<32x32xf32>
    %c1_125 = arith.constant 1 : index
    %c0_126 = arith.constant 0 : index
    %c0_127 = arith.constant 0 : index
    %c0_128 = arith.constant 0 : index
    %180 = vector.load %arg3[%c1_125, %c0_126, %c0_127, %c0_128] : memref<2x2x32x8xf32, #tpu.memory_space<vmem>>, vector<1x1x32x8xf32>
    %181 = vector.shape_cast %180 : vector<1x1x32x8xf32> to vector<32x8xf32>
    %cst_129 = arith.constant dense<0.000000e+00> : vector<32x8xf32>
    %182 = tpu.matmul %179, %181, %cst_129 {dimension_numbers = #tpu.dot_dimension_numbers<[1], [0], [0], [1], [0, 0, 1, 1], [], []>} : vector<32x32xf32>, vector<32x8xf32>, vector<32x8xf32> -> vector<32x8xf32>
    %c1_130 = arith.constant 1 : index
    %c0_131 = arith.constant 0 : index
    %c0_132 = arith.constant 0 : index
    %c0_133 = arith.constant 0 : index
    %183 = vector.load %arg6[%c1_130, %c0_131, %c0_132, %c0_133] : memref<2x2x1x8xf32, #tpu.memory_space<vmem>>, vector<1x1x1x8xf32>
    %184 = vector.shape_cast %183 : vector<1x1x1x8xf32> to vector<1x8xf32>
    %185 = vector.broadcast %184 : vector<1x8xf32> to vector<32x8xf32>
    %186 = arith.addf %182, %185 : vector<32x8xf32>
    %c1_134 = arith.constant 1 : index
    %c0_135 = arith.constant 0 : index
    %c0_136 = arith.constant 0 : index
    %c0_137 = arith.constant 0 : index
    %187 = vector.load %arg4[%c1_134, %c0_135, %c0_136, %c0_137] : memref<2x2x32x8xf32, #tpu.memory_space<vmem>>, vector<1x1x32x8xf32>
    %188 = vector.shape_cast %187 : vector<1x1x32x8xf32> to vector<32x8xf32>
    %cst_138 = arith.constant dense<0.000000e+00> : vector<32x8xf32>
    %189 = tpu.matmul %179, %188, %cst_138 {dimension_numbers = #tpu.dot_dimension_numbers<[1], [0], [0], [1], [0, 0, 1, 1], [], []>} : vector<32x32xf32>, vector<32x8xf32>, vector<32x8xf32> -> vector<32x8xf32>
    %c1_139 = arith.constant 1 : index
    %c0_140 = arith.constant 0 : index
    %c0_141 = arith.constant 0 : index
    %c0_142 = arith.constant 0 : index
    %190 = vector.load %arg7[%c1_139, %c0_140, %c0_141, %c0_142] : memref<2x2x1x8xf32, #tpu.memory_space<vmem>>, vector<1x1x1x8xf32>
    %191 = vector.shape_cast %190 : vector<1x1x1x8xf32> to vector<1x8xf32>
    %192 = vector.broadcast %191 : vector<1x8xf32> to vector<32x8xf32>
    %193 = arith.addf %189, %192 : vector<32x8xf32>
    %c1_143 = arith.constant 1 : index
    %c0_144 = arith.constant 0 : index
    %c0_145 = arith.constant 0 : index
    %c0_146 = arith.constant 0 : index
    %194 = vector.load %arg5[%c1_143, %c0_144, %c0_145, %c0_146] : memref<2x2x32x16xf32, #tpu.memory_space<vmem>>, vector<1x1x32x16xf32>
    %195 = vector.shape_cast %194 : vector<1x1x32x16xf32> to vector<32x16xf32>
    %cst_147 = arith.constant dense<0.000000e+00> : vector<32x16xf32>
    %196 = tpu.matmul %179, %195, %cst_147 {dimension_numbers = #tpu.dot_dimension_numbers<[1], [0], [0], [1], [0, 0, 1, 1], [], []>} : vector<32x32xf32>, vector<32x16xf32>, vector<32x16xf32> -> vector<32x16xf32>
    %c1_148 = arith.constant 1 : index
    %c0_149 = arith.constant 0 : index
    %c0_150 = arith.constant 0 : index
    %c0_151 = arith.constant 0 : index
    %197 = vector.load %arg8[%c1_148, %c0_149, %c0_150, %c0_151] : memref<2x2x1x16xf32, #tpu.memory_space<vmem>>, vector<1x1x1x16xf32>
    %198 = vector.shape_cast %197 : vector<1x1x1x16xf32> to vector<1x16xf32>
    %199 = vector.broadcast %198 : vector<1x16xf32> to vector<32x16xf32>
    %200 = arith.addf %196, %199 : vector<32x16xf32>
    %c1_152 = arith.constant 1 : index
    %c0_153 = arith.constant 0 : index
    %c0_154 = arith.constant 0 : index
    %c0_155 = arith.constant 0 : index
    %201 = vector.load %arg9[%c1_152, %c0_153, %c0_154, %c0_155] : memref<2x2x16x16xf32, #tpu.memory_space<vmem>>, vector<1x1x16x16xf32>
    %202 = vector.shape_cast %201 : vector<1x1x16x16xf32> to vector<16x16xf32>
    %203 = vector.extract_strided_slice %186 {offsets = [0, 0], sizes = [16, 8], strides = [1, 1]} : vector<32x8xf32> to vector<16x8xf32>
    %204 = vector.extract_strided_slice %193 {offsets = [0, 0], sizes = [16, 8], strides = [1, 1]} : vector<32x8xf32> to vector<16x8xf32>
    %205 = vector.extract_strided_slice %200 {offsets = [0, 0], sizes = [16, 16], strides = [1, 1]} : vector<32x16xf32> to vector<16x16xf32>
    %cst_156 = arith.constant dense<0.000000e+00> : vector<16x16xf32>
    %206 = tpu.matmul %203, %204, %cst_156 {dimension_numbers = #tpu.dot_dimension_numbers<[1], [1], [0], [0], [0, 0, 1, 0], [], []>} : vector<16x8xf32>, vector<16x8xf32>, vector<16x16xf32> -> vector<16x16xf32>
    %cst_157 = arith.constant 0.353553385 : f32
    %207 = vector.broadcast %cst_157 : f32 to vector<16x16xf32>
    %208 = arith.mulf %206, %207 : vector<16x16xf32>
    %209 = arith.addf %208, %202 : vector<16x16xf32>
    %cst_158 = arith.constant dense<0xFF800000> : vector<16xf32>
    %210 = vector.multi_reduction <maximumf>, %209, %cst_158 [1] : vector<16x16xf32> to vector<16xf32>
    %211 = vector.shape_cast %210 : vector<16xf32> to vector<16x1xf32>
    %212 = vector.broadcast %211 : vector<16x1xf32> to vector<16x16xf32>
    %213 = arith.subf %209, %212 : vector<16x16xf32>
    %214 = math.exp %213 : vector<16x16xf32>
    %cst_159 = arith.constant dense<0.000000e+00> : vector<16xf32>
    %215 = vector.multi_reduction <add>, %214, %cst_159 [1] : vector<16x16xf32> to vector<16xf32>
    %216 = vector.shape_cast %215 : vector<16xf32> to vector<16x1xf32>
    %217 = tpu.reciprocal %216 {approx = true} : vector<16x1xf32> -> vector<16x1xf32>
    %218 = vector.broadcast %217 : vector<16x1xf32> to vector<16x16xf32>
    %219 = arith.mulf %214, %218 : vector<16x16xf32>
    %cst_160 = arith.constant dense<0.000000e+00> : vector<16x16xf32>
    %220 = tpu.matmul %219, %205, %cst_160 {dimension_numbers = #tpu.dot_dimension_numbers<[1], [0], [0], [1], [0, 0, 1, 1], [], []>} : vector<16x16xf32>, vector<16x16xf32>, vector<16x16xf32> -> vector<16x16xf32>
    %221 = vector.extract_strided_slice %186 {offsets = [16, 0], sizes = [16, 8], strides = [1, 1]} : vector<32x8xf32> to vector<16x8xf32>
    %222 = vector.extract_strided_slice %193 {offsets = [16, 0], sizes = [16, 8], strides = [1, 1]} : vector<32x8xf32> to vector<16x8xf32>
    %223 = vector.extract_strided_slice %200 {offsets = [16, 0], sizes = [16, 16], strides = [1, 1]} : vector<32x16xf32> to vector<16x16xf32>
    %cst_161 = arith.constant dense<0.000000e+00> : vector<16x16xf32>
    %224 = tpu.matmul %221, %222, %cst_161 {dimension_numbers = #tpu.dot_dimension_numbers<[1], [1], [0], [0], [0, 0, 1, 0], [], []>} : vector<16x8xf32>, vector<16x8xf32>, vector<16x16xf32> -> vector<16x16xf32>
    %cst_162 = arith.constant 0.353553385 : f32
    %225 = vector.broadcast %cst_162 : f32 to vector<16x16xf32>
    %226 = arith.mulf %224, %225 : vector<16x16xf32>
    %227 = arith.addf %226, %202 : vector<16x16xf32>
    %cst_163 = arith.constant dense<0xFF800000> : vector<16xf32>
    %228 = vector.multi_reduction <maximumf>, %227, %cst_163 [1] : vector<16x16xf32> to vector<16xf32>
    %229 = vector.shape_cast %228 : vector<16xf32> to vector<16x1xf32>
    %230 = vector.broadcast %229 : vector<16x1xf32> to vector<16x16xf32>
    %231 = arith.subf %227, %230 : vector<16x16xf32>
    %232 = math.exp %231 : vector<16x16xf32>
    %cst_164 = arith.constant dense<0.000000e+00> : vector<16xf32>
    %233 = vector.multi_reduction <add>, %232, %cst_164 [1] : vector<16x16xf32> to vector<16xf32>
    %234 = vector.shape_cast %233 : vector<16xf32> to vector<16x1xf32>
    %235 = tpu.reciprocal %234 {approx = true} : vector<16x1xf32> -> vector<16x1xf32>
    %236 = vector.broadcast %235 : vector<16x1xf32> to vector<16x16xf32>
    %237 = arith.mulf %232, %236 : vector<16x16xf32>
    %cst_165 = arith.constant dense<0.000000e+00> : vector<16x16xf32>
    %238 = tpu.matmul %237, %223, %cst_165 {dimension_numbers = #tpu.dot_dimension_numbers<[1], [0], [0], [1], [0, 0, 1, 1], [], []>} : vector<16x16xf32>, vector<16x16xf32>, vector<16x16xf32> -> vector<16x16xf32>
    %239 = tpu.concatenate %220, %238 in 0 : vector<16x16xf32>, vector<16x16xf32> -> vector<32x16xf32>
    %cst_166 = arith.constant 3.000000e+00 : f32
    %240 = vector.broadcast %cst_166 : f32 to vector<32x16xf32>
    %241 = arith.addf %239, %240 : vector<32x16xf32>
    %cst_167 = arith.constant 0.000000e+00 : f32
    %cst_168 = arith.constant 6.000000e+00 : f32
    %242 = vector.broadcast %cst_167 : f32 to vector<32x16xf32>
    %243 = arith.maximumf %242, %241 : vector<32x16xf32>
    %244 = vector.broadcast %cst_168 : f32 to vector<32x16xf32>
    %245 = arith.minimumf %244, %243 : vector<32x16xf32>
    %246 = arith.mulf %239, %245 : vector<32x16xf32>
    %cst_169 = arith.constant 0.166666672 : f32
    %247 = vector.broadcast %cst_169 : f32 to vector<32x16xf32>
    %248 = arith.mulf %246, %247 : vector<32x16xf32>
    %c1_170 = arith.constant 1 : index
    %c0_171 = arith.constant 0 : index
    %c0_172 = arith.constant 0 : index
    %c0_173 = arith.constant 0 : index
    %249 = vector.load %arg10[%c1_170, %c0_171, %c0_172, %c0_173] : memref<2x2x16x32xf32, #tpu.memory_space<vmem>>, vector<1x1x16x32xf32>
    %250 = vector.shape_cast %249 : vector<1x1x16x32xf32> to vector<16x32xf32>
    %cst_174 = arith.constant dense<0.000000e+00> : vector<32x32xf32>
    %251 = tpu.matmul %248, %250, %cst_174 {dimension_numbers = #tpu.dot_dimension_numbers<[1], [0], [0], [1], [0, 0, 1, 1], [], []>} : vector<32x16xf32>, vector<16x32xf32>, vector<32x32xf32> -> vector<32x32xf32>
    %c1_175 = arith.constant 1 : index
    %c1_176 = arith.constant 1 : index
    %c0_177 = arith.constant 0 : index
    %c0_178 = arith.constant 0 : index
    %252 = vector.load %arg3[%c1_175, %c1_176, %c0_177, %c0_178] : memref<2x2x32x8xf32, #tpu.memory_space<vmem>>, vector<1x1x32x8xf32>
    %253 = vector.shape_cast %252 : vector<1x1x32x8xf32> to vector<32x8xf32>
    %cst_179 = arith.constant dense<0.000000e+00> : vector<32x8xf32>
    %254 = tpu.matmul %179, %253, %cst_179 {dimension_numbers = #tpu.dot_dimension_numbers<[1], [0], [0], [1], [0, 0, 1, 1], [], []>} : vector<32x32xf32>, vector<32x8xf32>, vector<32x8xf32> -> vector<32x8xf32>
    %c1_180 = arith.constant 1 : index
    %c1_181 = arith.constant 1 : index
    %c0_182 = arith.constant 0 : index
    %c0_183 = arith.constant 0 : index
    %255 = vector.load %arg6[%c1_180, %c1_181, %c0_182, %c0_183] : memref<2x2x1x8xf32, #tpu.memory_space<vmem>>, vector<1x1x1x8xf32>
    %256 = vector.shape_cast %255 : vector<1x1x1x8xf32> to vector<1x8xf32>
    %257 = vector.broadcast %256 : vector<1x8xf32> to vector<32x8xf32>
    %258 = arith.addf %254, %257 : vector<32x8xf32>
    %c1_184 = arith.constant 1 : index
    %c1_185 = arith.constant 1 : index
    %c0_186 = arith.constant 0 : index
    %c0_187 = arith.constant 0 : index
    %259 = vector.load %arg4[%c1_184, %c1_185, %c0_186, %c0_187] : memref<2x2x32x8xf32, #tpu.memory_space<vmem>>, vector<1x1x32x8xf32>
    %260 = vector.shape_cast %259 : vector<1x1x32x8xf32> to vector<32x8xf32>
    %cst_188 = arith.constant dense<0.000000e+00> : vector<32x8xf32>
    %261 = tpu.matmul %179, %260, %cst_188 {dimension_numbers = #tpu.dot_dimension_numbers<[1], [0], [0], [1], [0, 0, 1, 1], [], []>} : vector<32x32xf32>, vector<32x8xf32>, vector<32x8xf32> -> vector<32x8xf32>
    %c1_189 = arith.constant 1 : index
    %c1_190 = arith.constant 1 : index
    %c0_191 = arith.constant 0 : index
    %c0_192 = arith.constant 0 : index
    %262 = vector.load %arg7[%c1_189, %c1_190, %c0_191, %c0_192] : memref<2x2x1x8xf32, #tpu.memory_space<vmem>>, vector<1x1x1x8xf32>
    %263 = vector.shape_cast %262 : vector<1x1x1x8xf32> to vector<1x8xf32>
    %264 = vector.broadcast %263 : vector<1x8xf32> to vector<32x8xf32>
    %265 = arith.addf %261, %264 : vector<32x8xf32>
    %c1_193 = arith.constant 1 : index
    %c1_194 = arith.constant 1 : index
    %c0_195 = arith.constant 0 : index
    %c0_196 = arith.constant 0 : index
    %266 = vector.load %arg5[%c1_193, %c1_194, %c0_195, %c0_196] : memref<2x2x32x16xf32, #tpu.memory_space<vmem>>, vector<1x1x32x16xf32>
    %267 = vector.shape_cast %266 : vector<1x1x32x16xf32> to vector<32x16xf32>
    %cst_197 = arith.constant dense<0.000000e+00> : vector<32x16xf32>
    %268 = tpu.matmul %179, %267, %cst_197 {dimension_numbers = #tpu.dot_dimension_numbers<[1], [0], [0], [1], [0, 0, 1, 1], [], []>} : vector<32x32xf32>, vector<32x16xf32>, vector<32x16xf32> -> vector<32x16xf32>
    %c1_198 = arith.constant 1 : index
    %c1_199 = arith.constant 1 : index
    %c0_200 = arith.constant 0 : index
    %c0_201 = arith.constant 0 : index
    %269 = vector.load %arg8[%c1_198, %c1_199, %c0_200, %c0_201] : memref<2x2x1x16xf32, #tpu.memory_space<vmem>>, vector<1x1x1x16xf32>
    %270 = vector.shape_cast %269 : vector<1x1x1x16xf32> to vector<1x16xf32>
    %271 = vector.broadcast %270 : vector<1x16xf32> to vector<32x16xf32>
    %272 = arith.addf %268, %271 : vector<32x16xf32>
    %c1_202 = arith.constant 1 : index
    %c1_203 = arith.constant 1 : index
    %c0_204 = arith.constant 0 : index
    %c0_205 = arith.constant 0 : index
    %273 = vector.load %arg9[%c1_202, %c1_203, %c0_204, %c0_205] : memref<2x2x16x16xf32, #tpu.memory_space<vmem>>, vector<1x1x16x16xf32>
    %274 = vector.shape_cast %273 : vector<1x1x16x16xf32> to vector<16x16xf32>
    %275 = vector.extract_strided_slice %258 {offsets = [0, 0], sizes = [16, 8], strides = [1, 1]} : vector<32x8xf32> to vector<16x8xf32>
    %276 = vector.extract_strided_slice %265 {offsets = [0, 0], sizes = [16, 8], strides = [1, 1]} : vector<32x8xf32> to vector<16x8xf32>
    %277 = vector.extract_strided_slice %272 {offsets = [0, 0], sizes = [16, 16], strides = [1, 1]} : vector<32x16xf32> to vector<16x16xf32>
    %cst_206 = arith.constant dense<0.000000e+00> : vector<16x16xf32>
    %278 = tpu.matmul %275, %276, %cst_206 {dimension_numbers = #tpu.dot_dimension_numbers<[1], [1], [0], [0], [0, 0, 1, 0], [], []>} : vector<16x8xf32>, vector<16x8xf32>, vector<16x16xf32> -> vector<16x16xf32>
    %cst_207 = arith.constant 0.353553385 : f32
    %279 = vector.broadcast %cst_207 : f32 to vector<16x16xf32>
    %280 = arith.mulf %278, %279 : vector<16x16xf32>
    %281 = arith.addf %280, %274 : vector<16x16xf32>
    %cst_208 = arith.constant dense<0xFF800000> : vector<16xf32>
    %282 = vector.multi_reduction <maximumf>, %281, %cst_208 [1] : vector<16x16xf32> to vector<16xf32>
    %283 = vector.shape_cast %282 : vector<16xf32> to vector<16x1xf32>
    %284 = vector.broadcast %283 : vector<16x1xf32> to vector<16x16xf32>
    %285 = arith.subf %281, %284 : vector<16x16xf32>
    %286 = math.exp %285 : vector<16x16xf32>
    %cst_209 = arith.constant dense<0.000000e+00> : vector<16xf32>
    %287 = vector.multi_reduction <add>, %286, %cst_209 [1] : vector<16x16xf32> to vector<16xf32>
    %288 = vector.shape_cast %287 : vector<16xf32> to vector<16x1xf32>
    %289 = tpu.reciprocal %288 {approx = true} : vector<16x1xf32> -> vector<16x1xf32>
    %290 = vector.broadcast %289 : vector<16x1xf32> to vector<16x16xf32>
    %291 = arith.mulf %286, %290 : vector<16x16xf32>
    %cst_210 = arith.constant dense<0.000000e+00> : vector<16x16xf32>
    %292 = tpu.matmul %291, %277, %cst_210 {dimension_numbers = #tpu.dot_dimension_numbers<[1], [0], [0], [1], [0, 0, 1, 1], [], []>} : vector<16x16xf32>, vector<16x16xf32>, vector<16x16xf32> -> vector<16x16xf32>
    %293 = vector.extract_strided_slice %258 {offsets = [16, 0], sizes = [16, 8], strides = [1, 1]} : vector<32x8xf32> to vector<16x8xf32>
    %294 = vector.extract_strided_slice %265 {offsets = [16, 0], sizes = [16, 8], strides = [1, 1]} : vector<32x8xf32> to vector<16x8xf32>
    %295 = vector.extract_strided_slice %272 {offsets = [16, 0], sizes = [16, 16], strides = [1, 1]} : vector<32x16xf32> to vector<16x16xf32>
    %cst_211 = arith.constant dense<0.000000e+00> : vector<16x16xf32>
    %296 = tpu.matmul %293, %294, %cst_211 {dimension_numbers = #tpu.dot_dimension_numbers<[1], [1], [0], [0], [0, 0, 1, 0], [], []>} : vector<16x8xf32>, vector<16x8xf32>, vector<16x16xf32> -> vector<16x16xf32>
    %cst_212 = arith.constant 0.353553385 : f32
    %297 = vector.broadcast %cst_212 : f32 to vector<16x16xf32>
    %298 = arith.mulf %296, %297 : vector<16x16xf32>
    %299 = arith.addf %298, %274 : vector<16x16xf32>
    %cst_213 = arith.constant dense<0xFF800000> : vector<16xf32>
    %300 = vector.multi_reduction <maximumf>, %299, %cst_213 [1] : vector<16x16xf32> to vector<16xf32>
    %301 = vector.shape_cast %300 : vector<16xf32> to vector<16x1xf32>
    %302 = vector.broadcast %301 : vector<16x1xf32> to vector<16x16xf32>
    %303 = arith.subf %299, %302 : vector<16x16xf32>
    %304 = math.exp %303 : vector<16x16xf32>
    %cst_214 = arith.constant dense<0.000000e+00> : vector<16xf32>
    %305 = vector.multi_reduction <add>, %304, %cst_214 [1] : vector<16x16xf32> to vector<16xf32>
    %306 = vector.shape_cast %305 : vector<16xf32> to vector<16x1xf32>
    %307 = tpu.reciprocal %306 {approx = true} : vector<16x1xf32> -> vector<16x1xf32>
    %308 = vector.broadcast %307 : vector<16x1xf32> to vector<16x16xf32>
    %309 = arith.mulf %304, %308 : vector<16x16xf32>
    %cst_215 = arith.constant dense<0.000000e+00> : vector<16x16xf32>
    %310 = tpu.matmul %309, %295, %cst_215 {dimension_numbers = #tpu.dot_dimension_numbers<[1], [0], [0], [1], [0, 0, 1, 1], [], []>} : vector<16x16xf32>, vector<16x16xf32>, vector<16x16xf32> -> vector<16x16xf32>
    %311 = tpu.concatenate %292, %310 in 0 : vector<16x16xf32>, vector<16x16xf32> -> vector<32x16xf32>
    %cst_216 = arith.constant 3.000000e+00 : f32
    %312 = vector.broadcast %cst_216 : f32 to vector<32x16xf32>
    %313 = arith.addf %311, %312 : vector<32x16xf32>
    %cst_217 = arith.constant 0.000000e+00 : f32
    %cst_218 = arith.constant 6.000000e+00 : f32
    %314 = vector.broadcast %cst_217 : f32 to vector<32x16xf32>
    %315 = arith.maximumf %314, %313 : vector<32x16xf32>
    %316 = vector.broadcast %cst_218 : f32 to vector<32x16xf32>
    %317 = arith.minimumf %316, %315 : vector<32x16xf32>
    %318 = arith.mulf %311, %317 : vector<32x16xf32>
    %cst_219 = arith.constant 0.166666672 : f32
    %319 = vector.broadcast %cst_219 : f32 to vector<32x16xf32>
    %320 = arith.mulf %318, %319 : vector<32x16xf32>
    %c1_220 = arith.constant 1 : index
    %c1_221 = arith.constant 1 : index
    %c0_222 = arith.constant 0 : index
    %c0_223 = arith.constant 0 : index
    %321 = vector.load %arg10[%c1_220, %c1_221, %c0_222, %c0_223] : memref<2x2x16x32xf32, #tpu.memory_space<vmem>>, vector<1x1x16x32xf32>
    %322 = vector.shape_cast %321 : vector<1x1x16x32xf32> to vector<16x32xf32>
    %cst_224 = arith.constant dense<0.000000e+00> : vector<32x32xf32>
    %323 = tpu.matmul %320, %322, %cst_224 {dimension_numbers = #tpu.dot_dimension_numbers<[1], [0], [0], [1], [0, 0, 1, 1], [], []>} : vector<32x16xf32>, vector<16x32xf32>, vector<32x32xf32> -> vector<32x32xf32>
    %324 = arith.addf %251, %323 : vector<32x32xf32>
    %325 = arith.addf %179, %324 : vector<32x32xf32>
    %c1_225 = arith.constant 1 : index
    %c0_226 = arith.constant 0 : index
    %c0_227 = arith.constant 0 : index
    %326 = vector.load %arg11[%c1_225, %c0_226, %c0_227] : memref<2x1x32xf32, #tpu.memory_space<vmem>>, vector<1x1x32xf32>
    %327 = vector.shape_cast %326 : vector<1x1x32xf32> to vector<1x32xf32>
    %328 = vector.broadcast %327 : vector<1x32xf32> to vector<32x32xf32>
    %329 = arith.addf %325, %328 : vector<32x32xf32>
    %c1_228 = arith.constant 1 : index
    %c0_229 = arith.constant 0 : index
    %c0_230 = arith.constant 0 : index
    %330 = vector.load %arg12[%c1_228, %c0_229, %c0_230] : memref<2x32x64xf32, #tpu.memory_space<vmem>>, vector<1x32x64xf32>
    %331 = vector.shape_cast %330 : vector<1x32x64xf32> to vector<32x64xf32>
    %cst_231 = arith.constant dense<0.000000e+00> : vector<32x64xf32>
    %332 = tpu.matmul %329, %331, %cst_231 {dimension_numbers = #tpu.dot_dimension_numbers<[1], [0], [0], [1], [0, 0, 1, 1], [], []>} : vector<32x32xf32>, vector<32x64xf32>, vector<32x64xf32> -> vector<32x64xf32>
    %c1_232 = arith.constant 1 : index
    %c0_233 = arith.constant 0 : index
    %c0_234 = arith.constant 0 : index
    %333 = vector.load %arg13[%c1_232, %c0_233, %c0_234] : memref<2x1x64xf32, #tpu.memory_space<vmem>>, vector<1x1x64xf32>
    %334 = vector.shape_cast %333 : vector<1x1x64xf32> to vector<1x64xf32>
    %335 = vector.broadcast %334 : vector<1x64xf32> to vector<32x64xf32>
    %336 = arith.addf %332, %335 : vector<32x64xf32>
    %cst_235 = arith.constant 3.000000e+00 : f32
    %337 = vector.broadcast %cst_235 : f32 to vector<32x64xf32>
    %338 = arith.addf %336, %337 : vector<32x64xf32>
    %cst_236 = arith.constant 0.000000e+00 : f32
    %cst_237 = arith.constant 6.000000e+00 : f32
    %339 = vector.broadcast %cst_236 : f32 to vector<32x64xf32>
    %340 = arith.maximumf %339, %338 : vector<32x64xf32>
    %341 = vector.broadcast %cst_237 : f32 to vector<32x64xf32>
    %342 = arith.minimumf %341, %340 : vector<32x64xf32>
    %343 = arith.mulf %336, %342 : vector<32x64xf32>
    %cst_238 = arith.constant 0.166666672 : f32
    %344 = vector.broadcast %cst_238 : f32 to vector<32x64xf32>
    %345 = arith.mulf %343, %344 : vector<32x64xf32>
    %c1_239 = arith.constant 1 : index
    %c0_240 = arith.constant 0 : index
    %c0_241 = arith.constant 0 : index
    %346 = vector.load %arg14[%c1_239, %c0_240, %c0_241] : memref<2x64x32xf32, #tpu.memory_space<vmem>>, vector<1x64x32xf32>
    %347 = vector.shape_cast %346 : vector<1x64x32xf32> to vector<64x32xf32>
    %cst_242 = arith.constant dense<0.000000e+00> : vector<32x32xf32>
    %348 = tpu.matmul %345, %347, %cst_242 {dimension_numbers = #tpu.dot_dimension_numbers<[1], [0], [0], [1], [0, 0, 1, 1], [], []>} : vector<32x64xf32>, vector<64x32xf32>, vector<32x32xf32> -> vector<32x32xf32>
    %349 = arith.addf %329, %348 : vector<32x32xf32>
    %c1_243 = arith.constant 1 : index
    %c0_244 = arith.constant 0 : index
    %c0_245 = arith.constant 0 : index
    %350 = vector.load %arg15[%c1_243, %c0_244, %c0_245] : memref<2x1x32xf32, #tpu.memory_space<vmem>>, vector<1x1x32xf32>
    %351 = vector.shape_cast %350 : vector<1x1x32xf32> to vector<1x32xf32>
    %352 = vector.broadcast %351 : vector<1x32xf32> to vector<32x32xf32>
    %353 = arith.addf %349, %352 : vector<32x32xf32>
    %c0_246 = arith.constant 0 : index
    %c0_247 = arith.constant 0 : index
    %354 = vector.load %arg20[%c0_246, %c0_247] : memref<32x32xf32, #tpu.memory_space<vmem>>, vector<32x32xf32>
    tpu.vector_store %arg20[%c0_246, %c0_247], %353 {strides = array<i32>} : memref<32x32xf32, #tpu.memory_space<vmem>>, vector<32x32xf32>,
    %355 = vector.extract_strided_slice %353 {offsets = [0, 0], sizes = [16, 32], strides = [1, 1]} : vector<32x32xf32> to vector<16x32xf32>
    %cst_248 = arith.constant dense<0.000000e+00> : vector<32xf32>
    %356 = vector.multi_reduction <add>, %355, %cst_248 [0] : vector<16x32xf32> to vector<32xf32>
    %357 = vector.shape_cast %356 : vector<32xf32> to vector<1x32xf32>
    %cst_249 = arith.constant 1.600000e+01 : f32
    %358 = vector.broadcast %cst_249 : f32 to vector<1x32xf32>
    %359 = arith.divf %357, %358 : vector<1x32xf32>
    %360 = vector.extract_strided_slice %353 {offsets = [16, 0], sizes = [16, 32], strides = [1, 1]} : vector<32x32xf32> to vector<16x32xf32>
    %cst_250 = arith.constant dense<0.000000e+00> : vector<32xf32>
    %361 = vector.multi_reduction <add>, %360, %cst_250 [0] : vector<16x32xf32> to vector<32xf32>
    %362 = vector.shape_cast %361 : vector<32xf32> to vector<1x32xf32>
    %cst_251 = arith.constant 1.600000e+01 : f32
    %363 = vector.broadcast %cst_251 : f32 to vector<1x32xf32>
    %364 = arith.divf %362, %363 : vector<1x32xf32>
    %365 = tpu.concatenate %359, %364 in 0 : vector<1x32xf32>, vector<1x32xf32> -> vector<2x32xf32>
    %c0_252 = arith.constant 0 : index
    %c0_253 = arith.constant 0 : index
    %366 = vector.load %arg16[%c0_252, %c0_253] : memref<32x10xf32, #tpu.memory_space<vmem>>, vector<32x10xf32>
    %cst_254 = arith.constant dense<0.000000e+00> : vector<2x10xf32>
    %367 = tpu.matmul %365, %366, %cst_254 {dimension_numbers = #tpu.dot_dimension_numbers<[1], [0], [0], [1], [0, 0, 1, 1], [], []>} : vector<2x32xf32>, vector<32x10xf32>, vector<2x10xf32> -> vector<2x10xf32>
    %c0_255 = arith.constant 0 : index
    %c0_256 = arith.constant 0 : index
    %368 = vector.load %arg17[%c0_255, %c0_256] : memref<1x10xf32, #tpu.memory_space<vmem>>, vector<1x10xf32>
    %369 = vector.broadcast %368 : vector<1x10xf32> to vector<2x10xf32>
    %370 = arith.addf %367, %369 : vector<2x10xf32>
    %c0_257 = arith.constant 0 : index
    %c0_258 = arith.constant 0 : index
    %371 = vector.load %arg18[%c0_257, %c0_258] : memref<32x10xf32, #tpu.memory_space<vmem>>, vector<32x10xf32>
    %cst_259 = arith.constant dense<0.000000e+00> : vector<2x10xf32>
    %372 = tpu.matmul %365, %371, %cst_259 {dimension_numbers = #tpu.dot_dimension_numbers<[1], [0], [0], [1], [0, 0, 1, 1], [], []>} : vector<2x32xf32>, vector<32x10xf32>, vector<2x10xf32> -> vector<2x10xf32>
    %373 = arith.addf %370, %372 : vector<2x10xf32>
    %c0_260 = arith.constant 0 : index
    %c0_261 = arith.constant 0 : index
    %374 = vector.load %arg19[%c0_260, %c0_261] : memref<1x10xf32, #tpu.memory_space<vmem>>, vector<1x10xf32>
    %375 = vector.broadcast %374 : vector<1x10xf32> to vector<2x10xf32>
    %376 = arith.addf %373, %375 : vector<2x10xf32>
    %cst_262 = arith.constant 5.000000e-01 : f32
    %377 = vector.broadcast %cst_262 : f32 to vector<2x10xf32>
    %378 = arith.mulf %376, %377 : vector<2x10xf32>
    %c0_263 = arith.constant 0 : index
    %c0_264 = arith.constant 0 : index
    %379 = vector.load %arg21[%c0_263, %c0_264] : memref<2x10xf32, #tpu.memory_space<vmem>>, vector<2x10xf32>
    tpu.vector_store %arg21[%c0_263, %c0_264], %378 {strides = array<i32>} : memref<2x10xf32, #tpu.memory_space<vmem>>, vector<2x10xf32>,
    return
  }
}

</mosaic_0001>

<bundles_post_ra>
// kernel: levit_forward.1
= control target key start
LH: loop header
LB: loop body
LE: loop exit
PB: predicated region body
PF: predicated region fallthrough
CT: control target
= control target key end

     0   :  { %s6365_s0 = inlined_call_operand.vmem [shape: f32[32,48], index: 0, kind: input, shape index: {}]   ;;  %s6366_s1 = inlined_call_operand.vmem [shape: f32[48,32], index: 1, kind: input, shape index: {}]   ;;  %s6367_s2 = inlined_call_operand.vmem [shape: f32[1,32], index: 2, kind: input, shape index: {}]   ;;  %s6368_s3 = inlined_call_operand.vmem [shape: f32[2,2,32,8], index: 3, kind: input, shape index: {}]   ;;  %s6369_s4 = inlined_call_operand.vmem [shape: f32[2,2,32,8], index: 4, kind: input, shape index: {}]   ;;  %s6370_s5 = inlined_call_operand.vmem [shape: f32[2,2,32,16], index: 5, kind: input, shape index: {}]   ;;  %s6371_s6 = inlined_call_operand.vmem [shape: f32[2,2,1,8], index: 6, kind: input, shape index: {}]   ;;  %s6372_s7 = inlined_call_operand.vmem [shape: f32[2,2,1,8], index: 7, kind: input, shape index: {}]   ;;  %s6373_s8 = inlined_call_operand.vmem [shape: f32[2,2,1,16], index: 8, kind: input, shape index: {}]   ;;  %s6374_s9 = inlined_call_operand.vmem [shape: f32[2,2,16,16], index: 9, kind: input, shape index: {}]   ;;  %s6375_s10 = inlined_call_operand.vmem [shape: f32[2,2,16,32], index: 10, kind: input, shape index: {}]   ;;  %s6376_s11 = inlined_call_operand.vmem [shape: f32[2,1,32], index: 11, kind: input, shape index: {}]   ;;  %s6377_s12 = inlined_call_operand.vmem [shape: f32[2,32,64], index: 12, kind: input, shape index: {}]   ;;  %s6378_s13 = inlined_call_operand.vmem [shape: f32[2,1,64], index: 13, kind: input, shape index: {}]   ;;  %s6379_s14 = inlined_call_operand.vmem [shape: f32[2,64,32], index: 14, kind: input, shape index: {}]   ;;  %s6380_s15 = inlined_call_operand.vmem [shape: f32[2,1,32], index: 15, kind: input, shape index: {}]   ;;  %s6381_s16 = inlined_call_operand.vmem [shape: f32[32,10], index: 16, kind: input, shape index: {}]   ;;  %s6382_s17 = inlined_call_operand.vmem [shape: f32[1,10], index: 17, kind: input, shape index: {}]   ;;  %s6383_s18 = inlined_call_operand.vmem [shape: f32[32,10], index: 18, kind: input, shape index: {}]   ;;  %s6384_s19 = inlined_call_operand.vmem [shape: f32[1,10], index: 19, kind: input, shape index: {}]   ;;  %s6385_s20 = inlined_call_operand.hbm [shape: f32[32,32], index: 20, kind: output, shape index: {0}]   ;;  %s6386_s21 = inlined_call_operand.hbm [shape: f32[2,10], index: 21, kind: output, shape index: {1}]  }
   0x1   :  { %6392 = sst [smem:[#allocation8_spill]] %s6365_s0 }
   0x2   :  { %6393 = sst [smem:[#allocation9_spill]] %s6366_s1 }
   0x3   :  { %6394 = sst [smem:[#allocation10_spill]] %s6367_s2 }
   0x4   :  { %6395 = sst [smem:[#allocation11_spill]] %s6368_s3 }
   0x5   :  { %6396 = sst [smem:[#allocation12_spill]] %s6369_s4 }
   0x6   :  { %6397 = sst [smem:[#allocation13_spill]] %s6370_s5 }
   0x7   :  { %27 = vsyncpa [#allocation3], 0  ;;  %s6398_s26 = sld [smem:[#allocation9_spill]]  ;;  %vm86_vm0 = vcmask 392192   ;;  %s6399_s2 = sld [smem:[#allocation8_spill]] }
   0x8   :  { %s6400_s3 = sld [smem:[#allocation11_spill]] }
   0xd   :  { %v73_v0 = vld [vmem:[%s6398_s26] sm:$0xff]  ;;  %v74_v1 = vld [vmem:[%s6398_s26 + $0x8] sm:$0xff]  ;;  %v75_v2 = vld [vmem:[%s6398_s26 + $0x10] sm:$0xff] }
   0xe   :  { %v5085_v3 = vpack.c.bf16 %v74_v1, %v73_v0  ;;  %v76_v4 = vld [vmem:[%s6398_s26 + $0x18] sm:$0xff]  ;;  %v77_v6 = vld [vmem:[%s6398_s26 + $0x20] sm:$0xff]  ;;  %v78_v7 = vld [vmem:[%s6398_s26 + $0x28] sm:$0xff] }
   0xf   :  { %v5089_v5 = vpack.c.bf16 %v76_v4, %v75_v2  ;;  %v69_v8 = vld [vmem:[%s6399_s2] sm:$0xff]  ;;  %v185_v10 = vld [vmem:[%s6400_s3 + $0x8] sm:$0xff] }
  0x10   :  { %5086 = vmatprep.subr.bf16.mxu0 %v5085_v3  ;;  %4665 = vmatprep.mubr.msk.f32.mxu0 %vm86_vm0, %v69_v8  ;;  %v184_v9 = vld [vmem:[%s6400_s3] sm:$0xff] }
  0x11   :  { %5088 = vmatpush3.bf16.msra.mxu0 %v5085_v3  ;;  %v5097_v11 = vpack.c.bf16 %v185_v10, %v184_v9 }
  0x12   :  { %28 = vsyncpa [#allocation5], 0  ;;  %5090 = vmatprep.subr.bf16.mxu0 %v5089_v5  ;;  %v5093_v12 = vpack.c.bf16 %v78_v7, %v77_v6  ;;  %s6401_s4 = sld [smem:[#allocation13_spill]]  ;;  %v70_v16 = vld [vmem:[%s6399_s2 + $0x8] sm:$0xff]  ;;  %v71_v17 = vld [vmem:[%s6399_s2 + $0x10] sm:$0xff]  ;;  %s6402_s24 = sld [smem:[#allocation12_spill]] }
  0x13   :  { %5098 = vmatprep.subr.bf16.mxu1 %v5097_v11  ;;  %v72_v18 = vld [vmem:[%s6399_s2 + $0x18] sm:$0xff]  ;;  %v186_v19 = vld [vmem:[%s6400_s3 + $0x10] sm:$0xff]  ;;  %s6403_s26 = sld [smem:[#allocation10_spill]]  ;;  %vm195_vm1 = vcmask 261120   ;;  %v4197_v40 = vld [vmem:[%s6373_s8] ss:$0 sm:$0xff] }
  0x14   :  { %5100 = vmatpush3.bf16.msra.mxu1 %v5097_v11  ;;  %v187_v20 = vld [vmem:[%s6400_s3 + $0x18] sm:$0xff]  ;;  %v4187_v41 = vld [vmem:[%s6371_s6] ss:$0 sm:$0xff]  ;;  %vm487_vm2 = vcmask 64512   ;;  %vm579_vm4 = vcmask 130048   ;;  %vm1952_vm5 = vcmask 523264  }
  0x15   :  { %5092 = vmatpush3.bf16.msra.mxu0 %v5089_v5  ;;  %v5101_v22 = vpack.c.bf16 %v187_v20, %v186_v19  ;;  %v4192_v56 = vld [vmem:[%s6372_s7] ss:$0 sm:$0xff]  ;;  %vm5713_vm3 = vmpackc.low %vm487_vm2, %vm487_vm2  ;;  %v486_v19 = vld [vmem:[%s6374_s9 + $0x8] sm:$0xff]  ;;  %vm5477_vm6 = vmmov 0   ;;  %vm3980_vm7 = vcmask 1040384  }
  0x16   :  { %5094 = vmatprep.subr.bf16.mxu0 %v5093_v12  ;;  %v4355_v62 = vld [vmem:[%s6374_s9 + $0x30] sm:$0xff] }
  0x17   :  { %5102 = vmatprep.subr.bf16.mxu1 %v5101_v22 }
  0x18   :  { %v389_v13 = vld [vmem:[%s6401_s4] sm:$0xff]  ;;  %v390_v14 = vld [vmem:[%s6401_s4 + $0x8] sm:$0xff]  ;;  %v391_v21 = vld [vmem:[%s6401_s4 + $0x10] sm:$0xff]  ;;  %5104 = vmatpush3.bf16.msra.mxu1 %v5101_v22 }
  0x19   :  { %v5113_v15 = vpack.c.bf16 %v390_v14, %v389_v13  ;;  %5096 = vmatpush3.bf16.msra.mxu0 %v5093_v12  ;;  %v392_v23 = vld [vmem:[%s6401_s4 + $0x18] sm:$0xff]  ;;  %v293_v25 = vld [vmem:[%s6402_s24] sm:$0xff]  ;;  %v294_v26 = vld [vmem:[%s6402_s24 + $0x8] sm:$0xff] }
  0x1a   :  { %v5117_v24 = vpack.c.bf16 %v392_v23, %v391_v21  ;;  %v5105_v27 = vpack.c.bf16 %v294_v26, %v293_v25  ;;  %v4182_v28 = vld [vmem:[%s6403_s26] ss:$0 sm:$0xff]  ;;  %v295_v30 = vld [vmem:[%s6402_s24 + $0x10] sm:$0xff]  ;;  %v296_v31 = vld [vmem:[%s6402_s24 + $0x18] sm:$0xff] }
  0x1b   :  { %5114 = vmatprep.subr.bf16.mxu0 %v5113_v15  ;;  %v5109_v35 = vpack.c.bf16 %v296_v31, %v295_v30  ;;  %v4224_v5 = vld [vmem:[%s6402_s24 + $0x20] sm:$0xff]  ;;  %v4225_v6 = vld [vmem:[%s6402_s24 + $0x28] sm:$0xff]  ;;  %v4226_v10 = vld [vmem:[%s6402_s24 + $0x30] sm:$0xff] }
  0x1c   :  { %4666 = vmatmul.mubr.msk.f32.vlgmr.msra.gmra.mrb[0].mxu0 %vm86_vm0, %v70_v16  ;;  %5106 = vmatprep.subr.bf16.mxu1 %v5105_v27  ;;  %v5149_v8 = vpack.c.bf16 %v4225_v6, %v4224_v5  ;;  %v4227_v11 = vld [vmem:[%s6402_s24 + $0x38] sm:$0xff]  ;;  %v485_v16 = vld [vmem:[%s6374_s9] sm:$0xff] }
  0x1d   :  { %4668 = vmatprep.mubr.msk.f32.mxu0 %vm86_vm0, %v71_v17  ;;  %5116 = vmatpush3.bf16.msra.mxu0 %v5113_v15  ;;  %v5153_v13 = vpack.c.bf16 %v4227_v11, %v4226_v10  ;;  %v4229_v30 = vld [vmem:[%s6372_s7 + $0x1] ss:$0 sm:$0xff] }
  0x1e   :  { %5118 = vmatprep.subr.bf16.mxu0 %v5117_v24  ;;  %v4214_v11 = vld [vmem:[%s6400_s3 + $0x20] sm:$0xff] }
  0x20   :  { %4669 = vmatmul.mubr.msk.f32.gmra.mrb[2].mxu0 %vm86_vm0, %v72_v18 }
  0x21   :  { %5120 = vmatpush3.bf16.msra.mxu0 %v5117_v24 }
  0xef   :  { %v4667_v29 = vpop.f32.mrb[0].mxu0 }
  0xf0   :  { %v165_v32 = vpop.f32.mrb[1].mxu0  ;;  %v5668_v34 = vadd.f32 %v4667_v29, %v4182_v28 }
  0xf1   :  { %v5666_v33 = vadd.f32 %v4182_v28, %v165_v32 }
  0xf3   :  { %v4670_v36 = vpop.f32.mrb[2].mxu0  ;;  %4679 = vmatprep.mubr.msk.f32.mxu1 %vm195_vm1, %v5666_v33  ;;  %4707 = vmatprep.mubr.msk.f32.mxu0 %vm195_vm1, %v5666_v33 }
  0xf4   :  { %v175_v37 = vpop.f32.mrb[3].mxu0  ;;  %4680 = vmatmul.mubr.msk.f32.vlgmr.msra.gmra.mrb[0].mxu1 %vm195_vm1, %v5668_v34  ;;  %4708 = vmatmul.mubr.msk.f32.vlgmr.msra.gmra.mrb[4].mxu0 %vm195_vm1, %v5668_v34  ;;  %v5680_v39 = vadd.f32 %v4670_v36, %v4182_v28 }
  0xf5   :  { %v5678_v38 = vadd.f32 %v4182_v28, %v175_v37  ;;  %5108 = vmatpush3.bf16.msra.mxu1 %v5105_v27 }
  0xf6   :  { %5110 = vmatprep.subr.bf16.mxu1 %v5109_v35 }
  0xf7   :  { %4682 = vmatprep.mubr.msk.f32.mxu1 %vm195_vm1, %v5678_v38  ;;  %4710 = vmatprep.mubr.msk.f32.mxu0 %vm195_vm1, %v5678_v38 }
  0xf8   :  { %4683 = vmatmul.mubr.msk.f32.gmra.mrb[2].mxu1 %vm195_vm1, %v5680_v39  ;;  %4711 = vmatmul.mubr.msk.f32.gmra.mrb[6].mxu0 %vm195_vm1, %v5680_v39 }
  0xf9   :  { %5112 = vmatpush3.bf16.msra.mxu1 %v5109_v35  ;;  %4693 = vmatprep.mubr.msk.f32.mxu1 %vm195_vm1, %v5666_v33 }
  0xfc   :  { %4694 = vmatmul.mubr.msk.f32.vlgmr.msra.gmra.mrb[4].mxu1 %vm195_vm1, %v5668_v34 }
  0xfd   :  { %4696 = vmatprep.mubr.msk.f32.mxu1 %vm195_vm1, %v5678_v38 }
 0x100   :  { %4697 = vmatmul.mubr.msk.f32.gmra.mrb[6].mxu1 %vm195_vm1, %v5680_v39 }
 0x1c7   :  { %v4681_v42 = vpop.f32.mrb[0].mxu1  ;;  %v4709_v43 = vpop.f32.mrb[4].mxu0 }
 0x1c8   :  { %v472_v44 = vadd.f32 %v4709_v43, %v4197_v40  ;;  %v274_v45 = vpop.f32.mrb[1].mxu1  ;;  %v466_v46 = vpop.f32.mrb[5].mxu0  ;;  %v280_v7 = vadd.f32 %v4681_v42, %v4187_v41 }
 0x1c9   :  { %v275_v47 = vadd.f32 %v4187_v41, %v274_v45  ;;  %v467_v48 = vadd.f32 %v4197_v40, %v466_v46 }
 0x1cb   :  { %v5127_v49 = vpack.c.bf16 %v472_v44, %v467_v48  ;;  %v4684_v50 = vpop.f32.mrb[2].mxu1  ;;  %v4712_v51 = vpop.f32.mrb[6].mxu0  ;;  %4717 = vmatprep.mubr.msk.f32.mxu1 %vm487_vm2, %v275_v47 }
 0x1cc   :  { %v482_v52 = vadd.f32 %v4712_v51, %v4197_v40  ;;  %v284_v53 = vpop.f32.mrb[3].mxu1  ;;  %v476_v54 = vpop.f32.mrb[7].mxu0  ;;  %v290_v12 = vadd.f32 %v4684_v50, %v4187_v41 }
 0x1cd   :  { %v477_v55 = vadd.f32 %v4197_v40, %v476_v54  ;;  %5128 = vmatprep.subr.bf16.mxu0 %v5127_v49  ;;  %v285_v9 = vadd.f32 %v4187_v41, %v284_v53 }
 0x1ce   :  { %5130 = vmatpush3.bf16.msra.mxu0 %v5127_v49 }
 0x1cf   :  { %v5708_v57 = vpack.c.bf16 %v482_v52, %v477_v55  ;;  %v4695_v58 = vpop.f32.mrb[4].mxu1 }
 0x1d0   :  { %v376_v59 = vadd.f32 %v4695_v58, %v4192_v56  ;;  %v370_v60 = vpop.f32.mrb[5].mxu1 }
 0x1d1   :  { %v371_v61 = vadd.f32 %v4192_v56, %v370_v60  ;;  %5138 = vmatprep.subr.bf16.mxu0 %v5708_v57 }
 0x1d3   :  { %v5121_v63 = vpack.c.bf16 %v376_v59, %v371_v61  ;;  %v4698_v0 = vpop.f32.mrb[6].mxu1 }
 0x1d4   :  { %v386_v1 = vadd.f32 %v4698_v0, %v4192_v56  ;;  %v380_v2 = vpop.f32.mrb[7].mxu1 }
 0x1d5   :  { %v381_v3 = vadd.f32 %v4192_v56, %v380_v2  ;;  %5123 = vmatprep.subr.msk.bf16.mxu1 %vm5713_vm3, %v5121_v63 }
 0x1d6   :  { %5126 = vmatpush3.bf16.xpose.msk.msra.mxu1 %vm5713_vm3, %v5121_v63 }
 0x1d7   :  { %v5131_v4 = vpack.c.bf16 %v386_v1, %v381_v3 }
 0x1d9   :  { %5133 = vmatprep.subr.msk.bf16.mxu1 %vm5713_vm3, %v5131_v4 }
 0x1dd   :  { %4718 = vmatmul.mubr.msk.f32.vlgmr.msra.gmra.mrb[8].mxu1 %vm487_vm2, %v280_v7 }
 0x1de   :  { %5136 = vmatpush3.bf16.xpose.msk.msra.mxu1 %vm5713_vm3, %v5131_v4  ;;  %4731 = vmatprep.mubr.msk.f32.mxu1 %vm487_vm2, %v285_v9 }
 0x1df   :  { %5150 = vmatprep.subr.bf16.mxu1 %v5149_v8 }
 0x1e5   :  { %4732 = vmatmul.mubr.msk.f32.vlgmr.msra.gmra.mrb[10].mxu1 %vm487_vm2, %v290_v12  ;;  %v4215_v12 = vld [vmem:[%s6400_s3 + $0x28] sm:$0xff] }
 0x1e6   :  { %5152 = vmatpush3.bf16.msra.mxu1 %v5149_v8  ;;  %4763 = vmatprep.mubr.msk.f32.mxu1 %vm195_vm1, %v5666_v33 }
 0x1e7   :  { %5154 = vmatprep.subr.bf16.mxu1 %v5153_v13 }
 0x1ea   :  { %5156 = vmatpush3.bf16.msra.mxu1 %v5153_v13 }
 0x1ed   :  { %4764 = vmatmul.mubr.msk.f32.vlgmr.msra.gmra.mrb[12].mxu1 %vm195_vm1, %v5668_v34 }
 0x1ee   :  { %4766 = vmatprep.mubr.msk.f32.mxu1 %vm195_vm1, %v5678_v38 }
 0x1f1   :  { %4767 = vmatmul.mubr.msk.f32.gmra.mrb[14].mxu1 %vm195_vm1, %v5680_v39 }
 0x2b0   :  { %v4719_v14 = vpop.f32.mrb[8].mxu1 }
 0x2b1   :  { %v566_v15 = vpop.f32.mrb[9].mxu1  ;;  %v576_v17 = vmul.f32 0.35355338, %v4719_v14 }
 0x2b2   :  { %v575_v18 = vmul.f32 0.35355338, %v566_v15  ;;  %v5141_v15 = vpack.c.bf16 %v4215_v12, %v4214_v11 }
 0x2b3   :  { %v578_v22 = vadd.f32 %v576_v17, %v486_v19 }
 0x2b4   :  { %v577_v20 = vadd.f32 %v575_v18, %v485_v16  ;;  %v4216_v18 = vld [vmem:[%s6400_s3 + $0x30] sm:$0xff] }
 0x2b5   :  { %v583_v27 = vsel %vm579_vm4, %v578_v22, -inf }
 0x2b6   :  { %v580_v21 = vsel %vm579_vm4, %v577_v20, -inf }
 0x2b7   :  { %581 = vmax.xlane.f32.xlu0 %v580_v21 }
 0x2b8   :  { %v4733_v23 = vpop.f32.mrb[10].mxu1 }
 0x2b9   :  { %v761_v24 = vpop.f32.mrb[11].mxu1  ;;  %v771_v25 = vmul.f32 0.35355338, %v4733_v23  ;;  %v4234_v23 = vld [vmem:[%s6401_s4 + $0x20] sm:$0xff] }
 0x2ba   :  { %v770_v26 = vmul.f32 0.35355338, %v761_v24 }
 0x2bb   :  { %584 = vmax.xlane.f32.xlu0 %v583_v27  ;;  %v773_v31 = vadd.f32 %v771_v25, %v486_v19  ;;  %v4217_v19 = vld [vmem:[%s6400_s3 + $0x38] sm:$0xff]  ;;  %v4236_v25 = vld [vmem:[%s6401_s4 + $0x30] sm:$0xff] }
 0x2bc   :  { %v772_v28 = vadd.f32 %v770_v26, %v485_v16  ;;  %v4237_v26 = vld [vmem:[%s6401_s4 + $0x38] sm:$0xff] }
 0x2bd   :  { %v777_v40 = vsel %vm579_vm4, %v773_v31, -inf  ;;  %v5161_v27 = vpack.c.bf16 %v4237_v26, %v4236_v25 }
 0x2be   :  { %v774_v29 = vsel %vm579_vm4, %v772_v28, -inf }
 0x2bf   :  { %775 = vmax.xlane.f32.xlu1 %v774_v29 }
 0x2c0   :  { %v4765_v32 = vpop.f32.mrb[12].mxu1 }
 0x2c1   :  { %v1082_v35 = vadd.f32 %v4765_v32, %v4229_v30  ;;  %v1076_v36 = vpop.f32.mrb[13].mxu1  ;;  %v4219_v32 = vld [vmem:[%s6371_s6 + $0x1] ss:$0 sm:$0xff] }
 0x2c2   :  { %v1077_v37 = vadd.f32 %v4229_v30, %v1076_v36 }
 0x2c3   :  { %778 = vmax.xlane.f32.xlu1 %v777_v40 }
 0x2c4   :  { %v5165_v41 = vpack.c.bf16 %v1082_v35, %v1077_v37  ;;  %v4768_v42 = vpop.f32.mrb[14].mxu1 }
 0x2c5   :  { %v1092_v43 = vadd.f32 %v4768_v42, %v4229_v30  ;;  %v1086_v44 = vpop.f32.mrb[15].mxu1 }
 0x2c6   :  { %v1087_v45 = vadd.f32 %v4229_v30, %v1086_v44  ;;  %5167 = vmatprep.subr.msk.bf16.mxu1 %vm5713_vm3, %v5165_v41  ;;  %v4239_v44 = vld [vmem:[%s6373_s8 + $0x1] ss:$0 sm:$0xff] }
 0x2c7   :  { %5170 = vmatpush3.bf16.xpose.msk.msra.mxu1 %vm5713_vm3, %v5165_v41 }
 0x2c8   :  { %v5765_v46 = vpack.c.bf16 %v1092_v43, %v1087_v45 }
 0x344   :  { %v582_v47 = vpop.xlane.xlu0 %581 }
 0x345   :  { %v586_v48 = vsub.f32 %v577_v20, %v582_v47 }
 0x347   :  { %v588_v49 = vmul.f32 1.442695, %v586_v48 }
 0x348   :  { %v585_v50 = vpop.xlane.xlu0 %584 }
 0x349   :  { %5364 = vpow2.f32 %v588_v49  ;;  %v587_v51 = vsub.f32 %v578_v22, %v585_v50  ;;  %v5145_v22 = vpack.c.bf16 %v4217_v19, %v4216_v18 }
 0x34b   :  { %v590_v52 = vmul.f32 1.442695, %v587_v51 }
 0x34c   :  { %v776_v53 = vpop.xlane.xlu1 %775 }
 0x34d   :  { %5366 = vpow2.f32 %v590_v52  ;;  %v780_v54 = vsub.f32 %v772_v28, %v776_v53 }
 0x34f   :  { %v782_v55 = vmul.f32 1.442695, %v780_v54 }
 0x350   :  { %v779_v56 = vpop.xlane.xlu1 %778 }
 0x351   :  { %5368 = vpow2.f32 %v782_v55  ;;  %v781_v58 = vsub.f32 %v773_v31, %v779_v56 }
 0x353   :  { %v5365_v59 = vpop.eup %5364  ;;  %v784_v60 = vmul.f32 1.442695, %v781_v58  ;;  %v4245_v58 = vld [vmem:[%s6374_s9 + $0x18] sm:$0xff] }
 0x354   :  { %v592_v61 = vsel %vm579_vm4, %v5365_v59, 0.0 }
 0x355   :  { %5370 = vpow2.f32 %v784_v60  ;;  %593 = vadd.xlane.f32.xlu0 %v592_v61  ;;  %v4244_v61 = vld [vmem:[%s6374_s9 + $0x10] sm:$0xff] }
 0x357   :  { %v5367_v63 = vpop.eup %5366 }
 0x358   :  { %v595_v0 = vsel %vm579_vm4, %v5367_v63, 0.0 }
 0x359   :  { %596 = vadd.xlane.f32.xlu1 %v595_v0 }
 0x35b   :  { %v5369_v1 = vpop.eup %5368 }
 0x35c   :  { %v786_v2 = vsel %vm579_vm4, %v5369_v1, 0.0 }
 0x35d   :  { %787 = vadd.xlane.f32.xlu0 %v786_v2 }
 0x35f   :  { %v5371_v3 = vpop.eup %5370 }
 0x360   :  { %v789_v4 = vsel %vm579_vm4, %v5371_v3, 0.0 }
 0x361   :  { %790 = vadd.xlane.f32.xlu1 %v789_v4 }
 0x3e2   :  { %v594_v5 = vpop.xlane.xlu0 %593 }
 0x3e3   :  { %5372 = vrcp.f32 %v594_v5 }
 0x3e6   :  { %v597_v6 = vpop.xlane.xlu1 %596 }
 0x3e7   :  { %5374 = vrcp.f32 %v597_v6 }
 0x3ea   :  { %v788_v7 = vpop.xlane.xlu0 %787 }
 0x3eb   :  { %5376 = vrcp.f32 %v788_v7 }
 0x3ed   :  { %v5373_v8 = vpop.eup %5372 }
 0x3ee   :  { %v791_v9 = vpop.xlane.xlu1 %790  ;;  %v600_v10 = vmul.f32 %v5373_v8, %v5365_v59 }
 0x3ef   :  { %5378 = vrcp.f32 %v791_v9 }
 0x3f0   :  { %4724 = vmatprep.mubr.msk.f32.mxu0 %vm579_vm4, %v600_v10 }
 0x3f1   :  { %v5375_v13 = vpop.eup %5374 }
 0x3f2   :  { %v601_v14 = vmul.f32 %v5375_v13, %v5367_v63 }
 0x3f4   :  { %4725 = vmatmul.mubr.msk.f32.vlgmr.msra.gmra.mrb[8].mxu0 %vm579_vm4, %v601_v14 }
 0x3f5   :  { %v5377_v16 = vpop.eup %5376  ;;  %5140 = vmatpush3.bf16.msra.mxu0 %v5708_v57  ;;  %v4235_v57 = vld [vmem:[%s6401_s4 + $0x28] sm:$0xff] }
 0x3f6   :  { %v794_v17 = vmul.f32 %v5377_v16, %v5369_v1  ;;  %5142 = vmatprep.subr.bf16.mxu0 %v5141_v15  ;;  %v5157_v24 = vpack.c.bf16 %v4235_v57, %v4234_v23 }
 0x3f8   :  { %4738 = vmatprep.mubr.msk.f32.mxu0 %vm579_vm4, %v794_v17 }
 0x3f9   :  { %v5379_v20 = vpop.eup %5378 }
 0x3fa   :  { %v795_v21 = vmul.f32 %v5379_v20, %v5371_v3 }
 0x3fc   :  { %4739 = vmatmul.mubr.msk.f32.vlgmr.msra.gmra.mrb[10].mxu0 %vm579_vm4, %v795_v21 }
 0x3fd   :  { %5144 = vmatpush3.bf16.msra.mxu0 %v5141_v15  ;;  %4749 = vmatprep.mubr.msk.f32.mxu0 %vm195_vm1, %v5666_v33 }
 0x3fe   :  { %5146 = vmatprep.subr.bf16.mxu0 %v5145_v22 }
 0x401   :  { %5148 = vmatpush3.bf16.msra.mxu0 %v5145_v22 }
 0x402   :  { %5158 = vmatprep.subr.bf16.mxu0 %v5157_v24 }
 0x404   :  { %4750 = vmatmul.mubr.msk.f32.vlgmr.msra.gmra.mrb[12].mxu0 %vm195_vm1, %v5668_v34 }
 0x405   :  { %4752 = vmatprep.mubr.msk.f32.mxu0 %vm195_vm1, %v5678_v38  ;;  %5160 = vmatpush3.bf16.msra.mxu0 %v5157_v24 }
 0x406   :  { %5162 = vmatprep.subr.bf16.mxu0 %v5161_v27 }
 0x408   :  { %4753 = vmatmul.mubr.msk.f32.gmra.mrb[14].mxu0 %vm195_vm1, %v5680_v39 }
 0x409   :  { %5164 = vmatpush3.bf16.msra.mxu0 %v5161_v27  ;;  %4777 = vmatprep.mubr.msk.f32.mxu0 %vm195_vm1, %v5666_v33 }
 0x40a   :  { %5177 = vmatprep.subr.msk.bf16.mxu0 %vm5713_vm3, %v5765_v46 }
 0x40c   :  { %4778 = vmatmul.mubr.msk.f32.vlgmr.msra.gmra.mrb[16].mxu0 %vm195_vm1, %v5668_v34 }
 0x40d   :  { %4780 = vmatprep.mubr.msk.f32.mxu0 %vm195_vm1, %v5678_v38 }
 0x410   :  { %4781 = vmatmul.mubr.msk.f32.gmra.mrb[18].mxu0 %vm195_vm1, %v5680_v39 }
 0x412   :  { %5180 = vmatpush3.bf16.xpose.msk.msra.mxu0 %vm5713_vm3, %v5765_v46 }
 0x4c7   :  { %v5822_v28 = vpop.f32.mrb[8].mxu0 }
 0x4c8   :  { %v5824_v29 = vpop.f32.mrb[9].mxu0 }
 0x4cf   :  { %v5826_v30 = vpop.f32.mrb[10].mxu0 }
 0x4d0   :  { %v5828_v31 = vpop.f32.mrb[11].mxu0 }
 0x4d7   :  { %v4751_v35 = vpop.f32.mrb[12].mxu0 }
 0x4d8   :  { %v978_v36 = vpop.f32.mrb[13].mxu0  ;;  %v984_v40 = vadd.f32 %v4751_v35, %v4219_v32 }
 0x4d9   :  { %v979_v37 = vadd.f32 %v4219_v32, %v978_v36 }
 0x4db   :  { %v4754_v41 = vpop.f32.mrb[14].mxu0  ;;  %4787 = vmatprep.mubr.msk.f32.mxu1 %vm487_vm2, %v979_v37 }
 0x4dc   :  { %v988_v42 = vpop.f32.mrb[15].mxu0  ;;  %4788 = vmatmul.mubr.msk.f32.vlgmr.msra.gmra.mrb[16].mxu1 %vm487_vm2, %v984_v40  ;;  %v994_v45 = vadd.f32 %v4754_v41, %v4219_v32 }
 0x4dd   :  { %v989_v43 = vadd.f32 %v4219_v32, %v988_v42 }
 0x4df   :  { %v4779_v46 = vpop.f32.mrb[16].mxu0  ;;  %4801 = vmatprep.mubr.msk.f32.mxu0 %vm487_vm2, %v989_v43 }
 0x4e0   :  { %v1180_v47 = vadd.f32 %v4779_v46, %v4239_v44  ;;  %v1174_v48 = vpop.f32.mrb[17].mxu0  ;;  %4802 = vmatmul.mubr.msk.f32.vlgmr.msra.gmra.mrb[20].mxu0 %vm487_vm2, %v994_v45 }
 0x4e1   :  { %v1175_v49 = vadd.f32 %v4239_v44, %v1174_v48 }
 0x4e3   :  { %v5171_v50 = vpack.c.bf16 %v1180_v47, %v1175_v49  ;;  %v4782_v51 = vpop.f32.mrb[18].mxu0 }
 0x4e4   :  { %v1190_v52 = vadd.f32 %v4782_v51, %v4239_v44  ;;  %v1184_v53 = vpop.f32.mrb[19].mxu0  ;;  %v4258_v51 = vld [vmem:[%s6375_s10 + $0x10] sm:$0xff] }
 0x4e5   :  { %v1185_v54 = vadd.f32 %v4239_v44, %v1184_v53  ;;  %5172 = vmatprep.subr.bf16.mxu1 %v5171_v50 }
 0x4e6   :  { %5174 = vmatpush3.bf16.msra.mxu1 %v5171_v50 }
 0x4e7   :  { %v5840_v55 = vpack.c.bf16 %v1190_v52, %v1185_v54  ;;  %v4259_v52 = vld [vmem:[%s6375_s10 + $0x18] sm:$0xff]  ;;  %v897_v54 = vld [vmem:[%s6375_s10] sm:$0xff] }
 0x4e8   :  { %v5185_v53 = vpack.c.bf16 %v4259_v52, %v4258_v51 }
 0x4e9   :  { %5182 = vmatprep.subr.bf16.mxu1 %v5840_v55 }
 0x4ea   :  { %5186 = vmatprep.subr.bf16.mxu0 %v5185_v53 }
 0x4eb   :  { %5188 = vmatpush3.bf16.msra.mxu0 %v5185_v53  ;;  %v4268_v53 = vld [vmem:[%s6376_s11] ss:$0 sm:$0xff] }
 0x5af   :  { %v4789_v56 = vpop.f32.mrb[16].mxu1 }
 0x5b0   :  { %v1284_v59 = vmul.f32 0.35355338, %v4789_v56  ;;  %v1274_v60 = vpop.f32.mrb[17].mxu1 }
 0x5b1   :  { %v1283_v63 = vmul.f32 0.35355338, %v1274_v60 }
 0x5b2   :  { %v1286_v0 = vadd.f32 %v4245_v58, %v1284_v59  ;;  %v1817_v59 = vld [vmem:[%s6377_s12 + $0x8] sm:$0xff] }
 0x5b3   :  { %v4803_v1 = vpop.f32.mrb[20].mxu0  ;;  %v1285_v2 = vadd.f32 %v4244_v61, %v1283_v63 }
 0x5b4   :  { %v1478_v3 = vmul.f32 0.35355338, %v4803_v1  ;;  %v1468_v4 = vpop.f32.mrb[21].mxu0  ;;  %v1290_v5 = vsel %vm579_vm4, %v1286_v0, -inf }
 0x5b5   :  { %v1477_v6 = vmul.f32 0.35355338, %v1468_v4  ;;  %1291 = vmax.xlane.f32.xlu1 %v1290_v5  ;;  %v1287_v7 = vsel %vm579_vm4, %v1285_v2, -inf }
 0x5b6   :  { %1288 = vmax.xlane.f32.xlu0 %v1287_v7  ;;  %v1480_v8 = vadd.f32 %v4245_v58, %v1478_v3  ;;  %v1816_v58 = vld [vmem:[%s6377_s12] sm:$0xff]  ;;  %v878_v3 = vadd.f32 3.0, %v5822_v28 }
 0x5b7   :  { %v1479_v9 = vadd.f32 %v4244_v61, %v1477_v6  ;;  %v5193_v60 = vpack.c.bf16 %v1817_v59, %v1816_v58  ;;  %v877_v61 = vadd.f32 3.0, %v5824_v29  ;;  %v879_v6 = vadd.f32 3.0, %v5828_v31 }
 0x5b8   :  { %v1484_v10 = vsel %vm579_vm4, %v1480_v8, -inf }
 0x5b9   :  { %1485 = vmax.xlane.f32.xlu1 %v1484_v10  ;;  %v1481_v11 = vsel %vm579_vm4, %v1479_v9, -inf  ;;  %v881_v5 = vmax.f32 %v877_v61, 0.0 }
 0x5ba   :  { %1482 = vmax.xlane.f32.xlu0 %v1481_v11 }
 0x642   :  { %v1292_v12 = vpop.xlane.xlu1 %1291 }
 0x643   :  { %v1294_v13 = vsub.f32 %v1286_v0, %v1292_v12  ;;  %v1289_v14 = vpop.xlane.xlu0 %1288 }
 0x644   :  { %v1293_v15 = vsub.f32 %v1285_v2, %v1289_v14  ;;  %v882_v14 = vmax.f32 %v878_v3, 0.0 }
 0x645   :  { %v1297_v16 = vmul.f32 1.442695, %v1294_v13 }
 0x646   :  { %v1295_v17 = vmul.f32 1.442695, %v1293_v15  ;;  %v1486_v18 = vpop.xlane.xlu1 %1485  ;;  %v880_v15 = vadd.f32 3.0, %v5826_v30 }
 0x647   :  { %5380 = vpow2.f32 %v1297_v16  ;;  %v1488_v19 = vsub.f32 %v1480_v8, %v1486_v18  ;;  %v1483_v20 = vpop.xlane.xlu0 %1482  ;;  %v885_v18 = vmin.f32 %v881_v5, 6.0  ;;  %v1951_v5 = vld [vmem:[%s6379_s14 + $0x38] sm:$0xff] }
 0x648   :  { %5382 = vpow2.f32 %v1295_v17  ;;  %v1487_v21 = vsub.f32 %v1479_v9, %v1483_v20 }
 0x649   :  { %v1491_v22 = vmul.f32 1.442695, %v1488_v19  ;;  %v883_v19 = vmax.f32 %v879_v6, 0.0 }
 0x64a   :  { %v1489_v23 = vmul.f32 1.442695, %v1487_v21 }
 0x64b   :  { %5384 = vpow2.f32 %v1491_v22 }
 0x64c   :  { %5386 = vpow2.f32 %v1489_v23 }
 0x651   :  { %v5381_v57 = vpop.eup %5380 }
 0x652   :  { %v5383_v24 = vpop.eup %5382  ;;  %v1302_v25 = vsel %vm579_vm4, %v5381_v57, 0.0 }
 0x653   :  { %1303 = vadd.xlane.f32.xlu1 %v1302_v25  ;;  %v1299_v26 = vsel %vm579_vm4, %v5383_v24, 0.0  ;;  %v884_v25 = vmax.f32 %v880_v15, 0.0 }
 0x654   :  { %1300 = vadd.xlane.f32.xlu0 %v1299_v26 }
 0x655   :  { %v5385_v27 = vpop.eup %5384 }
 0x656   :  { %v5387_v32 = vpop.eup %5386  ;;  %v1496_v35 = vsel %vm579_vm4, %v5385_v27, 0.0 }
 0x657   :  { %1497 = vadd.xlane.f32.xlu1 %v1496_v35  ;;  %v1493_v36 = vsel %vm579_vm4, %v5387_v32, 0.0  ;;  %v887_v35 = vmin.f32 %v883_v19, 6.0 }
 0x658   :  { %1494 = vadd.xlane.f32.xlu0 %v1493_v36 }
 0x6e0   :  { %v1304_v37 = vpop.xlane.xlu1 %1303 }
 0x6e1   :  { %5388 = vrcp.f32 %v1304_v37  ;;  %v1301_v40 = vpop.xlane.xlu0 %1300 }
 0x6e2   :  { %5390 = vrcp.f32 %v1301_v40 }
 0x6e4   :  { %v1498_v41 = vpop.xlane.xlu1 %1497 }
 0x6e5   :  { %5392 = vrcp.f32 %v1498_v41  ;;  %v1495_v42 = vpop.xlane.xlu0 %1494  ;;  %v888_v41 = vmin.f32 %v884_v25, 6.0 }
 0x6e6   :  { %5394 = vrcp.f32 %v1495_v42 }
 0x6eb   :  { %v5389_v43 = vpop.eup %5388 }
 0x6ec   :  { %v5391_v44 = vpop.eup %5390  ;;  %v1308_v46 = vmul.f32 %v5389_v43, %v5381_v57 }
 0x6ed   :  { %v1307_v45 = vmul.f32 %v5391_v44, %v5383_v24  ;;  %v886_v24 = vmin.f32 %v882_v14, 6.0  ;;  %v891_v44 = vmul.f32 %v887_v35, %v5828_v31  ;;  %v1818_v31 = vld [vmem:[%s6377_s12 + $0x10] sm:$0xff] }
 0x6ef   :  { %v5393_v47 = vpop.eup %5392  ;;  %4794 = vmatprep.mubr.msk.f32.mxu1 %vm579_vm4, %v1307_v45  ;;  %v890_v40 = vmul.f32 %v5822_v28, %v886_v24  ;;  %v892_v45 = vmul.f32 %v5826_v30, %v888_v41  ;;  %v1944_v30 = vld [vmem:[%s6379_s14] sm:$0xff] }
 0x6f0   :  { %v5395_v48 = vpop.eup %5394  ;;  %4795 = vmatmul.mubr.msk.f32.vlgmr.msra.gmra.mrb[18].mxu1 %vm579_vm4, %v1308_v46  ;;  %v1502_v50 = vmul.f32 %v5393_v47, %v5385_v27  ;;  %v895_v46 = vmul.f32 0.16666667, %v891_v44  ;;  %v1819_v47 = vld [vmem:[%s6377_s12 + $0x18] sm:$0xff] }
 0x6f1   :  { %5184 = vmatpush3.bf16.msra.mxu1 %v5840_v55  ;;  %v1501_v49 = vmul.f32 %v5395_v48, %v5387_v32  ;;  %v898_v55 = vld [vmem:[%s6375_s10 + $0x8] sm:$0xff]  ;;  %v889_v32 = vmul.f32 %v885_v18, %v5824_v29  ;;  %v894_v29 = vmul.f32 0.16666667, %v890_v40  ;;  %v896_v28 = vmul.f32 0.16666667, %v892_v45 }
 0x6f2   :  { %v5189_v56 = vpack.c.bf16 %v898_v55, %v897_v54  ;;  %5194 = vmatprep.subr.bf16.mxu1 %v5193_v60  ;;  %v5197_v48 = vpack.c.bf16 %v1819_v47, %v1818_v31  ;;  %v4281_v31 = vld [vmem:[%s6400_s3 + $0x50] sm:$0xff]  ;;  %v4282_v47 = vld [vmem:[%s6400_s3 + $0x58] sm:$0xff] }
 0x6f3   :  { %4808 = vmatprep.mubr.msk.f32.mxu1 %vm579_vm4, %v1501_v49  ;;  %v893_v43 = vmul.f32 0.16666667, %v889_v32  ;;  %v1945_v49 = vld [vmem:[%s6379_s14 + $0x8] sm:$0xff] }
 0x6f4   :  { %4809 = vmatmul.mubr.msk.f32.vlgmr.msra.gmra.mrb[20].mxu1 %vm579_vm4, %v1502_v50  ;;  %5190 = vmatprep.subr.bf16.mxu0 %v5189_v56  ;;  %v5201_v50 = vpack.c.bf16 %v1945_v49, %v1944_v30  ;;  %v4301_v30 = vld [vmem:[%s6401_s4 + $0x50] sm:$0xff]  ;;  %v4302_v49 = vld [vmem:[%s6401_s4 + $0x58] sm:$0xff] }
 0x6f5   :  { %5196 = vmatpush3.bf16.msra.mxu1 %v5193_v60 }
 0x6f6   :  { %5198 = vmatprep.subr.bf16.mxu1 %v5197_v48 }
 0x6f9   :  { %5200 = vmatpush3.bf16.msra.mxu1 %v5197_v48  ;;  %v5221_v48 = vpack.c.bf16 %v4282_v47, %v4281_v31  ;;  %v4346_v31 = vld [vmem:[%s6401_s4 + $0x68] sm:$0xff] }
 0x6fa   :  { %5202 = vmatprep.subr.bf16.mxu1 %v5201_v50 }
 0x7c3   :  { %v4796_v63 = vpop.f32.mrb[18].mxu1 }
 0x7c4   :  { %v1585_v0 = vadd.f32 3.0, %v4796_v63  ;;  %v1381_v1 = vpop.f32.mrb[19].mxu1 }
 0x7c5   :  { %v1584_v2 = vadd.f32 3.0, %v1381_v1 }
 0x7c6   :  { %v1589_v4 = vmax.f32 %v1585_v0, 0.0 }
 0x7c7   :  { %v1588_v7 = vmax.f32 %v1584_v2, 0.0  ;;  %v4810_v8 = vpop.f32.mrb[20].mxu1  ;;  %v1949_v2 = vld [vmem:[%s6379_s14 + $0x28] sm:$0xff] }
 0x7c8   :  { %v1593_v9 = vmin.f32 %v1589_v4, 6.0  ;;  %v1587_v10 = vadd.f32 3.0, %v4810_v8  ;;  %v1575_v11 = vpop.f32.mrb[21].mxu1  ;;  %v1950_v4 = vld [vmem:[%s6379_s14 + $0x30] sm:$0xff] }
 0x7c9   :  { %v1592_v12 = vmin.f32 %v1588_v7, 6.0  ;;  %v1586_v13 = vadd.f32 3.0, %v1575_v11  ;;  %v5213_v6 = vpack.c.bf16 %v1951_v5, %v1950_v4  ;;  %v4279_v7 = vld [vmem:[%s6400_s3 + $0x40] sm:$0xff] }
 0x7ca   :  { %v1597_v16 = vmul.f32 %v4796_v63, %v1593_v9  ;;  %v1591_v17 = vmax.f32 %v1587_v10, 0.0  ;;  %v4299_v9 = vld [vmem:[%s6401_s4 + $0x40] sm:$0xff] }
 0x7cb   :  { %v1596_v20 = vmul.f32 %v1592_v12, %v1381_v1  ;;  %v1590_v21 = vmax.f32 %v1586_v13, 0.0  ;;  %v1948_v1 = vld [vmem:[%s6379_s14 + $0x20] sm:$0xff] }
 0x7cc   :  { %v1595_v22 = vmin.f32 %v1591_v17, 6.0  ;;  %v1601_v26 = vmul.f32 0.16666667, %v1597_v16  ;;  %v5209_v3 = vpack.c.bf16 %v1949_v2, %v1948_v1  ;;  %v4269_v13 = vld [vmem:[%s6378_s13] ss:$0 sm:$0xff] }
 0x7cd   :  { %v1600_v23 = vmul.f32 0.16666667, %v1596_v20  ;;  %v1594_v57 = vmin.f32 %v1590_v21, 6.0  ;;  %v4284_v5 = vld [vmem:[%s6371_s6 + $0x2] ss:$0 sm:$0xff] }
 0x7ce   :  { %v1599_v27 = vmul.f32 %v4810_v8, %v1595_v22  ;;  %v4280_v8 = vld [vmem:[%s6400_s3 + $0x48] sm:$0xff] }
 0x7cf   :  { %v1598_v36 = vmul.f32 %v1594_v57, %v1575_v11  ;;  %4815 = vmatprep.mubr.msk.f32.mxu0 %vm579_vm4, %v1600_v23  ;;  %v5217_v10 = vpack.c.bf16 %v4280_v8, %v4279_v7  ;;  %v4300_v11 = vld [vmem:[%s6401_s4 + $0x48] sm:$0xff] }
 0x7d0   :  { %4816 = vmatmul.mubr.msk.f32.vlgmr.msra.gmra.mrb[22].mxu0 %vm579_vm4, %v1601_v26  ;;  %v1603_v42 = vmul.f32 0.16666667, %v1599_v27  ;;  %v5233_v12 = vpack.c.bf16 %v4300_v11, %v4299_v9 }
 0x7d1   :  { %v1602_v37 = vmul.f32 0.16666667, %v1598_v36  ;;  %5192 = vmatpush3.bf16.msra.mxu0 %v5189_v56 }
 0x7d2   :  { %5218 = vmatprep.subr.bf16.mxu0 %v5217_v10 }
 0x7d3   :  { %4818 = vmatprep.mubr.msk.f32.mxu0 %vm579_vm4, %v1602_v37 }
 0x7d4   :  { %4819 = vmatmul.mubr.msk.f32.gmra.mrb[24].mxu0 %vm579_vm4, %v1603_v42 }
 0x7d5   :  { %4825 = vmatprep.mubr.msk.f32.mxu0 %vm579_vm4, %v893_v43 }
 0x7d8   :  { %4826 = vmatmul.mubr.msk.f32.vlgmr.msra.gmra.mrb[22].mxu0 %vm579_vm4, %v894_v29 }
 0x7d9   :  { %4828 = vmatprep.mubr.msk.f32.mxu0 %vm579_vm4, %v895_v46  ;;  %5220 = vmatpush3.bf16.msra.mxu0 %v5217_v10 }
 0x7da   :  { %5222 = vmatprep.subr.bf16.mxu0 %v5221_v48 }
 0x7dc   :  { %4829 = vmatmul.mubr.msk.f32.gmra.mrb[24].mxu0 %vm579_vm4, %v896_v28 }
 0x7dd   :  { %5224 = vmatpush3.bf16.msra.mxu0 %v5221_v48  ;;  %v4347_v48 = vld [vmem:[%s6401_s4 + $0x70] sm:$0xff] }
 0x8ab   :  { %v4827_v51 = vpop.f32.mrb[22].mxu0 }
 0x8ac   :  { %v1802_v52 = vadd.f32 %v4827_v51, %v5668_v34  ;;  %v1782_v54 = vpop.f32.mrb[23].mxu0  ;;  %v4289_v51 = vld [vmem:[%s6402_s24 + $0x40] sm:$0xff] }
 0x8ad   :  { %v1801_v55 = vadd.f32 %v1782_v54, %v5666_v33 }
 0x8ae   :  { %v5915_v59 = vadd.f32 %v4268_v53, %v1802_v52  ;;  %v4290_v52 = vld [vmem:[%s6402_s24 + $0x48] sm:$0xff] }
 0x8af   :  { %v5913_v56 = vadd.f32 %v4268_v53, %v1801_v55  ;;  %v4830_v58 = vpop.f32.mrb[24].mxu0 }
 0x8b0   :  { %v1804_v60 = vadd.f32 %v4830_v58, %v5680_v39  ;;  %v1792_v61 = vpop.f32.mrb[25].mxu0  ;;  %v1947_v39 = vld [vmem:[%s6379_s14 + $0x18] sm:$0xff]  ;;  %v4278_v58 = vld [vmem:[%s6380_s15] ss:$0 sm:$0xff] }
 0x8b1   :  { %v1803_v63 = vadd.f32 %v1792_v61, %v5678_v38  ;;  %4839 = vmatprep.mubr.msk.f32.mxu1 %vm195_vm1, %v5913_v56  ;;  %v1946_v38 = vld [vmem:[%s6379_s14 + $0x10] sm:$0xff] }
 0x8b2   :  { %4840 = vmatmul.mubr.msk.f32.vlgmr.msra.gmra.mrb[22].mxu1 %vm195_vm1, %v5915_v59  ;;  %v5925_v33 = vadd.f32 %v4268_v53, %v1804_v60  ;;  %v5205_v0 = vpack.c.bf16 %v1947_v39, %v1946_v38  ;;  %v4292_v38 = vld [vmem:[%s6402_s24 + $0x58] sm:$0xff] }
 0x8b3   :  { %v5923_v34 = vadd.f32 %v4268_v53, %v1803_v63  ;;  %5204 = vmatpush3.bf16.msra.mxu1 %v5201_v50  ;;  %v5237_v50 = vpack.c.bf16 %v4302_v49, %v4301_v30  ;;  %v5225_v53 = vpack.c.bf16 %v4290_v52, %v4289_v51  ;;  %v4291_v63 = vld [vmem:[%s6402_s24 + $0x50] sm:$0xff]  ;;  %v4348_v30 = vld [vmem:[%s6401_s4 + $0x78] sm:$0xff]  ;;  %v4310_v51 = vld [vmem:[%s6374_s9 + $0x28] sm:$0xff] }
 0x8b4   :  { %5206 = vmatprep.subr.bf16.mxu1 %v5205_v0  ;;  %v5281_v49 = vpack.c.bf16 %v4348_v30, %v4347_v48 }
 0x8b5   :  { %4842 = vmatprep.mubr.msk.f32.mxu1 %vm195_vm1, %v5923_v34  ;;  %5226 = vmatprep.subr.bf16.mxu0 %v5225_v53 }
 0x8b6   :  { %4843 = vmatmul.mubr.msk.f32.gmra.mrb[24].mxu1 %vm195_vm1, %v5925_v33 }
 0x8b7   :  { %5208 = vmatpush3.bf16.msra.mxu1 %v5205_v0 }
 0x8b8   :  { %5210 = vmatprep.subr.bf16.mxu1 %v5209_v3 }
 0x8bb   :  { %5212 = vmatpush3.bf16.msra.mxu1 %v5209_v3  ;;  %v5229_v3 = vpack.c.bf16 %v4292_v38, %v4291_v63 }
 0x8bc   :  { %5214 = vmatprep.subr.bf16.mxu1 %v5213_v6 }
 0x8bf   :  { %5216 = vmatpush3.bf16.msra.mxu1 %v5213_v6 }
 0x8c0   :  { %5234 = vmatprep.subr.bf16.mxu1 %v5233_v12 }
 0x985   :  { %v4841_v14 = vpop.f32.mrb[22].mxu1 }
 0x986   :  { %v1911_v15 = vadd.f32 %v4841_v14, %v4269_v13  ;;  %v1905_v16 = vpop.f32.mrb[23].mxu1 }
 0x987   :  { %v1906_v17 = vadd.f32 %v4269_v13, %v1905_v16 }
 0x988   :  { %v1925_v18 = vadd.f32 3.0, %v1911_v15 }
 0x989   :  { %v1924_v19 = vadd.f32 3.0, %v1906_v17  ;;  %v4844_v20 = vpop.f32.mrb[24].mxu1 }
 0x98a   :  { %v1929_v21 = vmax.f32 %v1925_v18, 0.0  ;;  %v1921_v22 = vadd.f32 %v4844_v20, %v4269_v13  ;;  %v1915_v23 = vpop.f32.mrb[25].mxu1 }
 0x98b   :  { %v1928_v57 = vmax.f32 %v1924_v19, 0.0  ;;  %v1916_v24 = vadd.f32 %v4269_v13, %v1915_v23 }
 0x98c   :  { %v1933_v25 = vmin.f32 %v1929_v21, 6.0  ;;  %v1927_v26 = vadd.f32 3.0, %v1921_v22  ;;  %v4294_v21 = vld [vmem:[%s6372_s7 + $0x2] ss:$0 sm:$0xff] }
 0x98d   :  { %v1932_v27 = vmin.f32 %v1928_v57, 6.0  ;;  %v1926_v32 = vadd.f32 3.0, %v1916_v24 }
 0x98e   :  { %v1937_v35 = vmul.f32 %v1933_v25, %v1911_v15  ;;  %v1931_v36 = vmax.f32 %v1927_v26, 0.0 }
 0x98f   :  { %v1936_v37 = vmul.f32 %v1932_v27, %v1906_v17  ;;  %v1930_v40 = vmax.f32 %v1926_v32, 0.0 }
 0x990   :  { %v1935_v41 = vmin.f32 %v1931_v36, 6.0  ;;  %v1941_v44 = vmul.f32 0.16666667, %v1937_v35  ;;  %v4325_v36 = vld [vmem:[%s6400_s3 + $0x60] sm:$0xff] }
 0x991   :  { %v1940_v42 = vmul.f32 0.16666667, %v1936_v37  ;;  %v1934_v43 = vmin.f32 %v1930_v40, 6.0  ;;  %v4326_v37 = vld [vmem:[%s6400_s3 + $0x68] sm:$0xff] }
 0x992   :  { %v1939_v29 = vmul.f32 %v1935_v41, %v1921_v22 }
 0x993   :  { %v1938_v45 = vmul.f32 %v1934_v43, %v1916_v24  ;;  %4861 = vmatprep.mubr.msk.f32.mxu1 %vm1952_vm5, %v1940_v42  ;;  %v5261_v42 = vpack.c.bf16 %v4326_v37, %v4325_v36 }
 0x994   :  { %4862 = vmatmul.mubr.msk.f32.vlgmr.msra.gmra.mrb[26].mxu1 %vm1952_vm5, %v1941_v44  ;;  %v1943_v28 = vmul.f32 0.16666667, %v1939_v29  ;;  %v4327_v44 = vld [vmem:[%s6400_s3 + $0x70] sm:$0xff]  ;;  %v4328_v29 = vld [vmem:[%s6400_s3 + $0x78] sm:$0xff] }
 0x995   :  { %v1942_v46 = vmul.f32 0.16666667, %v1938_v45  ;;  %5236 = vmatpush3.bf16.msra.mxu1 %v5233_v12 }
 0x996   :  { %5238 = vmatprep.subr.bf16.mxu1 %v5237_v50 }
 0x997   :  { %4864 = vmatprep.mubr.msk.f32.mxu1 %vm1952_vm5, %v1942_v46  ;;  %v5265_v46 = vpack.c.bf16 %v4328_v29, %v4327_v44 }
 0x998   :  { %4865 = vmatmul.mubr.msk.f32.gmra.mrb[28].mxu1 %vm1952_vm5, %v1943_v28  ;;  %v4345_v28 = vld [vmem:[%s6401_s4 + $0x60] sm:$0xff] }
 0x999   :  { %5240 = vmatpush3.bf16.msra.mxu1 %v5237_v50  ;;  %v5277_v47 = vpack.c.bf16 %v4346_v31, %v4345_v28 }
 0xa67   :  { %v4863_v54 = vpop.f32.mrb[26].mxu1 }
 0xa68   :  { %v2051_v55 = vadd.f32 %v4863_v54, %v5915_v59  ;;  %v2031_v60 = vpop.f32.mrb[27].mxu1  ;;  %v4309_v54 = vld [vmem:[%s6374_s9 + $0x20] sm:$0xff] }
 0xa69   :  { %v2050_v61 = vadd.f32 %v2031_v60, %v5913_v56 }
 0xa6a   :  { %v5999_v1 = vadd.f32 %v4278_v58, %v2051_v55 }
 0xa6b   :  { %v5997_v39 = vadd.f32 %v4278_v58, %v2050_v61  ;;  %v4866_v0 = vpop.f32.mrb[28].mxu1 }
 0xa6c   :  { %v2053_v59 = vadd.f32 %v4866_v0, %v5925_v33  ;;  %v2041_v2 = vpop.f32.mrb[29].mxu1 }
 0xa6d   :  { %v2052_v4 = vadd.f32 %v2041_v2, %v5923_v34  ;;  %4875 = vmatprep.mubr.msk.f32.mxu0 %vm195_vm1, %v5997_v39  ;;  %4903 = vmatprep.mubr.msk.f32.mxu1 %vm195_vm1, %v5997_v39  ;;  %v4304_v34 = vld [vmem:[%s6373_s8 + $0x2] ss:$0 sm:$0xff] }
 0xa6e   :  { %4876 = vmatmul.mubr.msk.f32.vlgmr.msra.gmra.mrb[26].mxu0 %vm195_vm1, %v5999_v1  ;;  %4904 = vmatmul.mubr.msk.f32.vlgmr.msra.gmra.mrb[30].mxu1 %vm195_vm1, %v5999_v1  ;;  %v6013_v33 = vadd.f32 %v4278_v58, %v2053_v59 }
 0xa6f   :  { %v6011_v56 = vadd.f32 %v4278_v58, %v2052_v4  ;;  %5228 = vmatpush3.bf16.msra.mxu0 %v5225_v53 }
 0xa70   :  { %5230 = vmatprep.subr.bf16.mxu0 %v5229_v3 }
 0xa71   :  { %4878 = vmatprep.mubr.msk.f32.mxu0 %vm195_vm1, %v6011_v56  ;;  %4906 = vmatprep.mubr.msk.f32.mxu1 %vm195_vm1, %v6011_v56 }
 0xa72   :  { %4879 = vmatmul.mubr.msk.f32.gmra.mrb[28].mxu0 %vm195_vm1, %v6013_v33  ;;  %4907 = vmatmul.mubr.msk.f32.gmra.mrb[32].mxu1 %vm195_vm1, %v6013_v33 }
 0xa73   :  { %5232 = vmatpush3.bf16.msra.mxu0 %v5229_v3  ;;  %4889 = vmatprep.mubr.msk.f32.mxu0 %vm195_vm1, %v5997_v39 }
 0xa76   :  { %4890 = vmatmul.mubr.msk.f32.vlgmr.msra.gmra.mrb[30].mxu0 %vm195_vm1, %v5999_v1 }
 0xa77   :  { %4892 = vmatprep.mubr.msk.f32.mxu0 %vm195_vm1, %v6011_v56 }
 0xa7a   :  { %4893 = vmatmul.mubr.msk.f32.gmra.mrb[32].mxu0 %vm195_vm1, %v6013_v33 }
 0xb41   :  { %v4877_v6 = vpop.f32.mrb[26].mxu0  ;;  %v4905_v7 = vpop.f32.mrb[30].mxu1 }
 0xb42   :  { %v2358_v8 = vadd.f32 %v4905_v7, %v4304_v34  ;;  %v2156_v9 = vpop.f32.mrb[27].mxu0  ;;  %v2352_v10 = vpop.f32.mrb[31].mxu1  ;;  %v2162_v43 = vadd.f32 %v4877_v6, %v4284_v5  ;;  %v4330_v6 = vld [vmem:[%s6371_s6 + $0x3] ss:$0 sm:$0xff] }
 0xb43   :  { %v2157_v11 = vadd.f32 %v4284_v5, %v2156_v9  ;;  %v2353_v12 = vadd.f32 %v4304_v34, %v2352_v10 }
 0xb45   :  { %v5247_v13 = vpack.c.bf16 %v2358_v8, %v2353_v12  ;;  %v4880_v14 = vpop.f32.mrb[28].mxu0  ;;  %v4908_v15 = vpop.f32.mrb[32].mxu1  ;;  %4913 = vmatprep.mubr.msk.f32.mxu0 %vm487_vm2, %v2157_v11 }
 0xb46   :  { %v2368_v16 = vadd.f32 %v4908_v15, %v4304_v34  ;;  %v2166_v17 = vpop.f32.mrb[29].mxu0  ;;  %v2362_v18 = vpop.f32.mrb[33].mxu1  ;;  %v2172_v45 = vadd.f32 %v4880_v14, %v4284_v5  ;;  %v4350_v15 = vld [vmem:[%s6373_s8 + $0x3] ss:$0 sm:$0xff]  ;;  %s5479_s8 = smov [#allocation2]  }
 0xb47   :  { %v2167_v19 = vadd.f32 %v4284_v5, %v2166_v17  ;;  %v2363_v20 = vadd.f32 %v4304_v34, %v2362_v18  ;;  %s4157_s1 = sshll.u32 %s5479_s8, 4  ;;  %s4158_s1 = int_to_ptr.vmem [resolvable:$true] %s4157_s1 }
 0xb48   :  { %s5428_s25 = scalar_lea.vmem %s4158_s1, 512  ;;  %p5433_p1 = scmp.lt.s32.totalorder %s4158_s1, %s4158_s1 }
 0xb49   :  { %v6041_v22 = vpack.c.bf16 %v2368_v16, %v2363_v20  ;;  %v4891_v23 = vpop.f32.mrb[30].mxu0  ;;  %4927 = vmatprep.mubr.msk.f32.mxu1 %vm487_vm2, %v2167_v19  ;;  %p5429_p0 = scmp.ne.s32.totalorder %s4158_s1, %s5428_s25  ;;  %p5434_p2 = scmp.lt.s32.totalorder %s5428_s25, %s5428_s25 }
 0xb4a   :  { %v2260_v57 = vadd.f32 %v4891_v23, %v4294_v21  ;;  %v2254_v24 = vpop.f32.mrb[31].mxu0 }
 0xb4b   :  { %v2255_v25 = vadd.f32 %v4294_v21, %v2254_v24  ;;  %p5435_p3 = por %p5434_p2, %p5433_p1 }
 0xb4d   :  { %v5241_v26 = vpack.c.bf16 %v2260_v57, %v2255_v25  ;;  %v4894_v27 = vpop.f32.mrb[32].mxu0  ;;  %p5436_p4 = pnand %p5435_p3, %p5429_p0 }
 0xb4e   :  { %v2270_v32 = vadd.f32 %v4894_v27, %v4294_v21  ;;  %v2264_v35 = vpop.f32.mrb[33].mxu0 }
 0xb4f   :  { %v2265_v40 = vadd.f32 %v4294_v21, %v2264_v35  ;;  %5243 = vmatprep.subr.msk.bf16.mxu0 %vm5713_vm3, %v5241_v26 }
 0xb50   :  { %5246 = vmatpush3.bf16.xpose.msk.msra.mxu0 %vm5713_vm3, %v5241_v26 }
 0xb51   :  { %v5251_v41 = vpack.c.bf16 %v2270_v32, %v2265_v40  ;;  %5248 = vmatprep.subr.bf16.mxu0 %v5247_v13 }
 0xb53   :  { %5253 = vmatprep.subr.msk.bf16.mxu1 %vm5713_vm3, %v5251_v41 }
 0xb54   :  { %5256 = vmatpush3.bf16.xpose.msk.msra.mxu1 %vm5713_vm3, %v5251_v41 }
 0xb55   :  { %5262 = vmatprep.subr.bf16.mxu1 %v5261_v42 }
 0xb57   :  { %4914 = vmatmul.mubr.msk.f32.vlgmr.msra.gmra.mrb[34].mxu0 %vm487_vm2, %v2162_v43 }
 0xb58   :  { %5250 = vmatpush3.bf16.msra.mxu0 %v5247_v13 }
 0xb59   :  { %5258 = vmatprep.subr.bf16.mxu0 %v6041_v22 }
 0xb5b   :  { %4928 = vmatmul.mubr.msk.f32.vlgmr.msra.gmra.mrb[34].mxu1 %vm487_vm2, %v2172_v45 }
 0xb5c   :  { %5264 = vmatpush3.bf16.msra.mxu1 %v5261_v42  ;;  %4945 = vmatprep.mubr.msk.f32.mxu1 %vm195_vm1, %v5997_v39 }
 0xb5d   :  { %5266 = vmatprep.subr.bf16.mxu1 %v5265_v46 }
 0xb60   :  { %5268 = vmatpush3.bf16.msra.mxu1 %v5265_v46 }
 0xb61   :  { %5278 = vmatprep.subr.bf16.mxu1 %v5277_v47 }
 0xb63   :  { %4946 = vmatmul.mubr.msk.f32.vlgmr.msra.gmra.mrb[36].mxu1 %vm195_vm1, %v5999_v1 }
 0xb64   :  { %4948 = vmatprep.mubr.msk.f32.mxu1 %vm195_vm1, %v6011_v56  ;;  %5280 = vmatpush3.bf16.msra.mxu1 %v5277_v47 }
 0xb65   :  { %5282 = vmatprep.subr.bf16.mxu1 %v5281_v49 }
 0xb67   :  { %4949 = vmatmul.mubr.msk.f32.gmra.mrb[38].mxu1 %vm195_vm1, %v6013_v33 }
 0xb68   :  { %5284 = vmatpush3.bf16.msra.mxu1 %v5281_v49  ;;  %4973 = vmatprep.mubr.msk.f32.mxu1 %vm195_vm1, %v5997_v39 }
 0xb6b   :  { %4974 = vmatmul.mubr.msk.f32.vlgmr.msra.gmra.mrb[40].mxu1 %vm195_vm1, %v5999_v1 }
 0xb6c   :  { %4976 = vmatprep.mubr.msk.f32.mxu1 %vm195_vm1, %v6011_v56 }
 0xb6f   :  { %4977 = vmatmul.mubr.msk.f32.gmra.mrb[42].mxu1 %vm195_vm1, %v6013_v33 }
 0xc2a   :  { %v4915_v50 = vpop.f32.mrb[34].mxu0 }
 0xc2b   :  { %v2462_v52 = vmul.f32 0.35355338, %v4915_v50  ;;  %v2452_v53 = vpop.f32.mrb[35].mxu0 }
 0xc2c   :  { %v2461_v55 = vmul.f32 0.35355338, %v2452_v53 }
 0xc2d   :  { %v2464_v58 = vadd.f32 %v4310_v51, %v2462_v52 }
 0xc2e   :  { %v4929_v60 = vpop.f32.mrb[34].mxu1  ;;  %v2463_v61 = vadd.f32 %v4309_v54, %v2461_v55  ;;  %v4335_v55 = vld [vmem:[%s6402_s24 + $0x60] sm:$0xff] }
 0xc2f   :  { %v2656_v63 = vmul.f32 0.35355338, %v4929_v60  ;;  %v2646_v38 = vpop.f32.mrb[35].mxu1  ;;  %v2468_v0 = vsel %vm579_vm4, %v2464_v58, -inf }
 0xc30   :  { %v2655_v59 = vmul.f32 0.35355338, %v2646_v38  ;;  %2469 = vmax.xlane.f32.xlu1 %v2468_v0  ;;  %v2465_v2 = vsel %vm579_vm4, %v2463_v61, -inf }
 0xc31   :  { %2466 = vmax.xlane.f32.xlu0 %v2465_v2  ;;  %v2658_v3 = vadd.f32 %v4310_v51, %v2656_v63  ;;  %v4338_v2 = vld [vmem:[%s6402_s24 + $0x78] sm:$0xff] }
 0xc32   :  { %v2657_v4 = vadd.f32 %v4309_v54, %v2655_v59  ;;  %v4337_v59 = vld [vmem:[%s6402_s24 + $0x70] sm:$0xff] }
 0xc33   :  { %v2662_v34 = vsel %vm579_vm4, %v2658_v3, -inf }
 0xc34   :  { %2663 = vmax.xlane.f32.xlu1 %v2662_v34  ;;  %v2659_v5 = vsel %vm579_vm4, %v2657_v4, -inf }
 0xc35   :  { %2660 = vmax.xlane.f32.xlu0 %v2659_v5  ;;  %v5273_v5 = vpack.c.bf16 %v4338_v2, %v4337_v59 }
 0xc36   :  { %v4947_v7 = vpop.f32.mrb[36].mxu1 }
 0xc37   :  { %v6108_v8 = vadd.f32 %v4947_v7, %v4330_v6  ;;  %v2864_v9 = vpop.f32.mrb[37].mxu1 }
 0xc38   :  { %v6110_v10 = vadd.f32 %v4330_v6, %v2864_v9 }
 0xc3a   :  { %v4950_v11 = vpop.f32.mrb[38].mxu1 }
 0xc3b   :  { %v6112_v12 = vadd.f32 %v4950_v11, %v4330_v6  ;;  %v2874_v13 = vpop.f32.mrb[39].mxu1  ;;  %v4340_v11 = vld [vmem:[%s6372_s7 + $0x3] ss:$0 sm:$0xff] }
 0xc3c   :  { %v2875_v14 = vadd.f32 %v4330_v6, %v2874_v13 }
 0xc3e   :  { %v4975_v16 = vpop.f32.mrb[40].mxu1  ;;  %4997 = vmatprep.mubr.msk.f32.mxu1 %vm487_vm2, %v2875_v14 }
 0xc3f   :  { %v3066_v17 = vadd.f32 %v4975_v16, %v4350_v15  ;;  %v3060_v18 = vpop.f32.mrb[41].mxu1 }
 0xc40   :  { %v3061_v19 = vadd.f32 %v4350_v15, %v3060_v18 }
 0xc42   :  { %v6118_v20 = vpack.c.bf16 %v3066_v17, %v3061_v19  ;;  %v4978_v21 = vpop.f32.mrb[42].mxu1 }
 0xc43   :  { %v3076_v23 = vadd.f32 %v4978_v21, %v4350_v15  ;;  %v3070_v57 = vpop.f32.mrb[43].mxu1 }
 0xc44   :  { %v3071_v24 = vadd.f32 %v4350_v15, %v3070_v57 }
 0xc46   :  { %v6120_v25 = vpack.c.bf16 %v3076_v23, %v3071_v24  ;;  %v4356_v24 = vld [vmem:[%s6374_s9 + $0x38] sm:$0xff] }
 0xcbd   :  { %v2470_v26 = vpop.xlane.xlu1 %2469 }
 0xcbe   :  { %v2472_v27 = vsub.f32 %v2464_v58, %v2470_v26  ;;  %v2467_v32 = vpop.xlane.xlu0 %2466  ;;  %v4336_v58 = vld [vmem:[%s6402_s24 + $0x68] sm:$0xff] }
 0xcbf   :  { %v2471_v35 = vsub.f32 %v2463_v61, %v2467_v32  ;;  %v5269_v38 = vpack.c.bf16 %v4336_v58, %v4335_v55 }
 0xcc0   :  { %v2475_v36 = vmul.f32 1.442695, %v2472_v27 }
 0xcc1   :  { %v2473_v37 = vmul.f32 1.442695, %v2471_v35  ;;  %v2664_v40 = vpop.xlane.xlu1 %2663 }
 0xcc2   :  { %5396 = vpow2.f32 %v2475_v36  ;;  %v2666_v41 = vsub.f32 %v2658_v3, %v2664_v40  ;;  %v2661_v42 = vpop.xlane.xlu0 %2660 }
 0xcc3   :  { %5398 = vpow2.f32 %v2473_v37  ;;  %v2665_v43 = vsub.f32 %v2657_v4, %v2661_v42 }
 0xcc4   :  { %v2669_v44 = vmul.f32 1.442695, %v2666_v41 }
 0xcc5   :  { %v2667_v29 = vmul.f32 1.442695, %v2665_v43 }
 0xcc6   :  { %5400 = vpow2.f32 %v2669_v44 }
 0xcc7   :  { %5402 = vpow2.f32 %v2667_v29 }
 0xccc   :  { %v5397_v45 = vpop.eup %5396 }
 0xccd   :  { %v5399_v46 = vpop.eup %5398  ;;  %v2480_v28 = vsel %vm579_vm4, %v5397_v45, 0.0 }
 0xcce   :  { %2481 = vadd.xlane.f32.xlu1 %v2480_v28  ;;  %v2477_v31 = vsel %vm579_vm4, %v5399_v46, 0.0 }
 0xccf   :  { %2478 = vadd.xlane.f32.xlu0 %v2477_v31 }
 0xcd0   :  { %v5401_v47 = vpop.eup %5400 }
 0xcd1   :  { %v5403_v48 = vpop.eup %5402  ;;  %v2674_v30 = vsel %vm579_vm4, %v5401_v47, 0.0 }
 0xcd2   :  { %2675 = vadd.xlane.f32.xlu1 %v2674_v30  ;;  %v2671_v49 = vsel %vm579_vm4, %v5403_v48, 0.0 }
 0xcd3   :  { %2672 = vadd.xlane.f32.xlu0 %v2671_v49 }
 0xd5b   :  { %v2482_v50 = vpop.xlane.xlu1 %2481 }
 0xd5c   :  { %5404 = vrcp.f32 %v2482_v50  ;;  %v2479_v51 = vpop.xlane.xlu0 %2478 }
 0xd5d   :  { %5406 = vrcp.f32 %v2479_v51 }
 0xd5f   :  { %v2676_v52 = vpop.xlane.xlu1 %2675 }
 0xd60   :  { %5408 = vrcp.f32 %v2676_v52  ;;  %v2673_v53 = vpop.xlane.xlu0 %2672 }
 0xd61   :  { %5410 = vrcp.f32 %v2673_v53 }
 0xd66   :  { %v5405_v54 = vpop.eup %5404 }
 0xd67   :  { %v5407_v60 = vpop.eup %5406  ;;  %v2486_v63 = vmul.f32 %v5405_v54, %v5397_v45 }
 0xd68   :  { %v2485_v61 = vmul.f32 %v5407_v60, %v5399_v46 }
 0xd6a   :  { %v5409_v0 = vpop.eup %5408  ;;  %4920 = vmatprep.mubr.msk.f32.mxu0 %vm579_vm4, %v2485_v61 }
 0xd6b   :  { %v5411_v3 = vpop.eup %5410  ;;  %4921 = vmatmul.mubr.msk.f32.vlgmr.msra.gmra.mrb[36].mxu0 %vm579_vm4, %v2486_v63  ;;  %v2680_v34 = vmul.f32 %v5409_v0, %v5401_v47 }
 0xd6c   :  { %5260 = vmatpush3.bf16.msra.mxu0 %v6041_v22  ;;  %v2679_v4 = vmul.f32 %v5411_v3, %v5403_v48 }
 0xd6d   :  { %5270 = vmatprep.subr.bf16.mxu0 %v5269_v38 }
 0xd6e   :  { %4934 = vmatprep.mubr.msk.f32.mxu0 %vm579_vm4, %v2679_v4 }
 0xd6f   :  { %4935 = vmatmul.mubr.msk.f32.vlgmr.msra.gmra.mrb[38].mxu0 %vm579_vm4, %v2680_v34 }
 0xd70   :  { %5272 = vmatpush3.bf16.msra.mxu0 %v5269_v38  ;;  %4959 = vmatprep.mubr.msk.f32.mxu0 %vm195_vm1, %v5997_v39 }
 0xd71   :  { %5274 = vmatprep.subr.bf16.mxu0 %v5273_v5 }
 0xd74   :  { %5276 = vmatpush3.bf16.msra.mxu0 %v5273_v5 }
 0xd77   :  { %4960 = vmatmul.mubr.msk.f32.vlgmr.msra.gmra.mrb[40].mxu0 %vm195_vm1, %v5999_v1 }
 0xd78   :  { %4962 = vmatprep.mubr.msk.f32.mxu0 %vm195_vm1, %v6011_v56 }
 0xd7b   :  { %4963 = vmatmul.mubr.msk.f32.gmra.mrb[42].mxu0 %vm195_vm1, %v6013_v33 }
 0xd7c   :  { %4983 = vmatprep.mubr.msk.f32.mxu0 %vm487_vm2, %v6110_v10 }
 0xe3e   :  { %v6153_v22 = vpop.f32.mrb[36].mxu0 }
 0xe3f   :  { %v6155_v6 = vpop.f32.mrb[37].mxu0 }
 0xe42   :  { %v6157_v7 = vpop.f32.mrb[38].mxu0 }
 0xe43   :  { %v6159_v9 = vpop.f32.mrb[39].mxu0 }
 0xe4a   :  { %v4961_v13 = vpop.f32.mrb[40].mxu0 }
 0xe4b   :  { %v2968_v14 = vadd.f32 %v4961_v13, %v4340_v11  ;;  %v2962_v15 = vpop.f32.mrb[41].mxu0 }
 0xe4c   :  { %v2963_v16 = vadd.f32 %v4340_v11, %v2962_v15 }
 0xe4e   :  { %v5285_v17 = vpack.c.bf16 %v2968_v14, %v2963_v16  ;;  %v4964_v18 = vpop.f32.mrb[42].mxu0 }
 0xe4f   :  { %v2978_v19 = vadd.f32 %v4964_v18, %v4340_v11  ;;  %v2972_v10 = vpop.f32.mrb[43].mxu0  ;;  %v4369_v18 = vld [vmem:[%s6375_s10 + $0x30] sm:$0xff] }
 0xe50   :  { %v2973_v21 = vadd.f32 %v4340_v11, %v2972_v10  ;;  %5287 = vmatprep.subr.msk.bf16.mxu0 %vm5713_vm3, %v5285_v17 }
 0xe51   :  { %5290 = vmatpush3.bf16.xpose.msk.msra.mxu0 %vm5713_vm3, %v5285_v17 }
 0xe52   :  { %v5295_v23 = vpack.c.bf16 %v2978_v19, %v2973_v21  ;;  %5292 = vmatprep.subr.bf16.mxu0 %v6118_v20  ;;  %v4370_v19 = vld [vmem:[%s6375_s10 + $0x38] sm:$0xff]  ;;  %v4324_v21 = vld [vmem:[%s6375_s10 + $0x28] sm:$0xff] }
 0xe53   :  { %v5305_v10 = vpack.c.bf16 %v4370_v19, %v4369_v18  ;;  %v4380_v19 = vld [vmem:[%s6376_s11 + $0x1] ss:$0 sm:$0xff] }
 0xe54   :  { %5297 = vmatprep.subr.msk.bf16.mxu1 %vm5713_vm3, %v5295_v23 }
 0xe55   :  { %5300 = vmatpush3.bf16.xpose.msk.msra.mxu1 %vm5713_vm3, %v5295_v23 }
 0xe56   :  { %5306 = vmatprep.subr.bf16.mxu1 %v5305_v10 }
 0xe58   :  { %4984 = vmatmul.mubr.msk.f32.vlgmr.msra.gmra.mrb[44].mxu0 %vm487_vm2, %v6108_v8 }
 0xe59   :  { %5294 = vmatpush3.bf16.msra.mxu0 %v6118_v20 }
 0xe5a   :  { %5302 = vmatprep.subr.bf16.mxu0 %v6120_v25 }
 0xe5c   :  { %4998 = vmatmul.mubr.msk.f32.vlgmr.msra.gmra.mrb[44].mxu1 %vm487_vm2, %v6112_v12 }
 0xe5d   :  { %5308 = vmatpush3.bf16.msra.mxu1 %v5305_v10 }
 0xf2b   :  { %v4985_v57 = vpop.f32.mrb[44].mxu0 }
 0xf2c   :  { %v3170_v26 = vmul.f32 0.35355338, %v4985_v57  ;;  %v3160_v27 = vpop.f32.mrb[45].mxu0  ;;  %v4381_v57 = vld [vmem:[%s6377_s12 + $0x20] sm:$0xff] }
 0xf2d   :  { %v3169_v32 = vmul.f32 0.35355338, %v3160_v27  ;;  %v2762_v27 = vadd.f32 3.0, %v6155_v6 }
 0xf2e   :  { %v3172_v8 = vadd.f32 %v4356_v24, %v3170_v26 }
 0xf2f   :  { %v4999_v35 = vpop.f32.mrb[44].mxu1  ;;  %v3171_v20 = vadd.f32 %v4355_v62, %v3169_v32 }
 0xf30   :  { %v3364_v36 = vmul.f32 0.35355338, %v4999_v35  ;;  %v3354_v37 = vpop.f32.mrb[45].mxu1  ;;  %v3176_v40 = vsel %vm579_vm4, %v3172_v8, -inf }
 0xf31   :  { %v3363_v12 = vmul.f32 0.35355338, %v3354_v37  ;;  %3177 = vmax.xlane.f32.xlu1 %v3176_v40  ;;  %v3173_v41 = vsel %vm579_vm4, %v3171_v20, -inf  ;;  %v2766_v37 = vmax.f32 %v2762_v27, 0.0  ;;  %v2764_v40 = vadd.f32 3.0, %v6159_v9 }
 0xf32   :  { %3174 = vmax.xlane.f32.xlu0 %v3173_v41  ;;  %v3366_v42 = vadd.f32 %v4356_v24, %v3364_v36  ;;  %v4382_v24 = vld [vmem:[%s6377_s12 + $0x28] sm:$0xff] }
 0xf33   :  { %v3365_v43 = vadd.f32 %v4355_v62, %v3363_v12  ;;  %v5313_v26 = vpack.c.bf16 %v4382_v24, %v4381_v57 }
 0xf34   :  { %v3370_v44 = vsel %vm579_vm4, %v3366_v42, -inf }
 0xf35   :  { %3371 = vmax.xlane.f32.xlu1 %v3370_v44  ;;  %v3367_v29 = vsel %vm579_vm4, %v3365_v43, -inf }
 0xf36   :  { %3368 = vmax.xlane.f32.xlu0 %v3367_v29 }
 0xfbe   :  { %v3178_v45 = vpop.xlane.xlu1 %3177 }
 0xfbf   :  { %v3180_v46 = vsub.f32 %v3172_v8, %v3178_v45  ;;  %v3175_v28 = vpop.xlane.xlu0 %3174 }
 0xfc0   :  { %v3179_v31 = vsub.f32 %v3171_v20, %v3175_v28  ;;  %v2763_v20 = vadd.f32 3.0, %v6153_v22  ;;  %v2765_v28 = vadd.f32 3.0, %v6157_v7 }
 0xfc1   :  { %v3183_v47 = vmul.f32 1.442695, %v3180_v46 }
 0xfc2   :  { %v3181_v48 = vmul.f32 1.442695, %v3179_v31  ;;  %v3372_v30 = vpop.xlane.xlu1 %3371  ;;  %v2767_v46 = vmax.f32 %v2763_v20, 0.0  ;;  %v4397_v20 = vld [vmem:[%s6379_s14 + $0x70] sm:$0xff] }
 0xfc3   :  { %5412 = vpow2.f32 %v3183_v47  ;;  %v3374_v49 = vsub.f32 %v3366_v42, %v3372_v30  ;;  %v3369_v50 = vpop.xlane.xlu0 %3368  ;;  %v2768_v30 = vmax.f32 %v2764_v40, 0.0  ;;  %v4386_v40 = vld [vmem:[%s6378_s13 + $0x1] ss:$0 sm:$0xff] }
 0xfc4   :  { %5414 = vpow2.f32 %v3181_v48  ;;  %v3373_v51 = vsub.f32 %v3365_v43, %v3369_v50  ;;  %v2770_v48 = vmin.f32 %v2766_v37, 6.0 }
 0xfc5   :  { %v3377_v52 = vmul.f32 1.442695, %v3374_v49 }
 0xfc6   :  { %v3375_v53 = vmul.f32 1.442695, %v3373_v51 }
 0xfc7   :  { %5416 = vpow2.f32 %v3377_v52 }
 0xfc8   :  { %5418 = vpow2.f32 %v3375_v53 }
 0xfcd   :  { %v5413_v54 = vpop.eup %5412 }
 0xfce   :  { %v5415_v55 = vpop.eup %5414  ;;  %v3188_v58 = vsel %vm579_vm4, %v5413_v54, 0.0 }
 0xfcf   :  { %3189 = vadd.xlane.f32.xlu1 %v3188_v58  ;;  %v3185_v60 = vsel %vm579_vm4, %v5415_v55, 0.0 }
 0xfd0   :  { %3186 = vadd.xlane.f32.xlu0 %v3185_v60 }
 0xfd1   :  { %v5417_v61 = vpop.eup %5416 }
 0xfd2   :  { %v5419_v63 = vpop.eup %5418  ;;  %v3382_v38 = vsel %vm579_vm4, %v5417_v61, 0.0 }
 0xfd3   :  { %3383 = vadd.xlane.f32.xlu1 %v3382_v38  ;;  %v3379_v0 = vsel %vm579_vm4, %v5419_v63, 0.0 }
 0xfd4   :  { %3380 = vadd.xlane.f32.xlu0 %v3379_v0 }
0x105c   :  { %v3190_v59 = vpop.xlane.xlu1 %3189 }
0x105d   :  { %5420 = vrcp.f32 %v3190_v59  ;;  %v3187_v2 = vpop.xlane.xlu0 %3186 }
0x105e   :  { %5422 = vrcp.f32 %v3187_v2 }
0x1060   :  { %v3384_v3 = vpop.xlane.xlu1 %3383 }
0x1061   :  { %5424 = vrcp.f32 %v3384_v3  ;;  %v3381_v4 = vpop.xlane.xlu0 %3380 }
0x1062   :  { %5426 = vrcp.f32 %v3381_v4 }
0x1067   :  { %v5421_v34 = vpop.eup %5420 }
0x1068   :  { %v5423_v5 = vpop.eup %5422  ;;  %v3194_v13 = vmul.f32 %v5421_v34, %v5413_v54  ;;  %v2771_v54 = vmin.f32 %v2767_v46, 6.0 }
0x1069   :  { %v3193_v11 = vmul.f32 %v5423_v5, %v5415_v55  ;;  %v2769_v55 = vmax.f32 %v2765_v28, 0.0 }
0x106a   :  { %v2775_v59 = vmul.f32 %v6153_v22, %v2771_v54 }
0x106b   :  { %v5425_v14 = vpop.eup %5424  ;;  %4990 = vmatprep.mubr.msk.f32.mxu0 %vm579_vm4, %v3193_v11  ;;  %v2773_v2 = vmin.f32 %v2769_v55, 6.0 }
0x106c   :  { %v5427_v15 = vpop.eup %5426  ;;  %4991 = vmatmul.mubr.msk.f32.vlgmr.msra.gmra.mrb[46].mxu0 %vm579_vm4, %v3194_v13  ;;  %v3388_v17 = vmul.f32 %v5425_v14, %v5417_v61  ;;  %v2774_v61 = vmul.f32 %v2770_v48, %v6155_v6  ;;  %v2779_v6 = vmul.f32 0.16666667, %v2775_v59  ;;  %v4384_v13 = vld [vmem:[%s6377_s12 + $0x38] sm:$0xff] }
0x106d   :  { %5304 = vmatpush3.bf16.msra.mxu0 %v6120_v25  ;;  %v3387_v16 = vmul.f32 %v5427_v15, %v5419_v63  ;;  %v4323_v25 = vld [vmem:[%s6375_s10 + $0x20] sm:$0xff]  ;;  %v2772_v63 = vmin.f32 %v2768_v30, 6.0  ;;  %v2777_v5 = vmul.f32 %v6157_v7, %v2773_v2  ;;  %v4392_v15 = vld [vmem:[%s6379_s14 + $0x48] sm:$0xff] }
0x106e   :  { %v5309_v23 = vpack.c.bf16 %v4324_v21, %v4323_v25  ;;  %5314 = vmatprep.subr.bf16.mxu0 %v5313_v26  ;;  %v2778_v4 = vmul.f32 0.16666667, %v2774_v61  ;;  %v4391_v7 = vld [vmem:[%s6379_s14 + $0x40] sm:$0xff] }
0x106f   :  { %5004 = vmatprep.mubr.msk.f32.mxu0 %vm579_vm4, %v3387_v16  ;;  %v2776_v34 = vmul.f32 %v2772_v63, %v6159_v9  ;;  %v2781_v22 = vmul.f32 0.16666667, %v2777_v5  ;;  %v4383_v9 = vld [vmem:[%s6377_s12 + $0x30] sm:$0xff]  ;;  %v5321_v16 = vpack.c.bf16 %v4392_v15, %v4391_v7 }
0x1070   :  { %5005 = vmatmul.mubr.msk.f32.vlgmr.msra.gmra.mrb[48].mxu0 %vm579_vm4, %v3388_v17  ;;  %5310 = vmatprep.subr.bf16.mxu1 %v5309_v23  ;;  %v5317_v14 = vpack.c.bf16 %v4384_v13, %v4383_v9  ;;  %v3984_v5 = vld [vmem:[%s6381_s16 + $0x10] sm:$0xff]  ;;  %v5478_v9 = vmov 0.0  }
0x1071   :  { %5316 = vmatpush3.bf16.msra.mxu0 %v5313_v26  ;;  %v2780_v11 = vmul.f32 0.16666667, %v2776_v34 }
0x1072   :  { %5318 = vmatprep.subr.bf16.mxu0 %v5317_v14 }
0x1075   :  { %5320 = vmatpush3.bf16.msra.mxu0 %v5317_v14  ;;  %v4404_v14 = vld [vmem:[%s6380_s15 + $0x1] ss:$0 sm:$0xff] }
0x1076   :  { %5322 = vmatprep.subr.bf16.mxu0 %v5321_v16 }
0x113f   :  { %v4992_v62 = vpop.f32.mrb[46].mxu0 }
0x1140   :  { %v3471_v32 = vadd.f32 3.0, %v4992_v62  ;;  %v3267_v8 = vpop.f32.mrb[47].mxu0 }
0x1141   :  { %v3470_v35 = vadd.f32 3.0, %v3267_v8 }
0x1142   :  { %v3475_v36 = vmax.f32 %v3471_v32, 0.0  ;;  %v4395_v32 = vld [vmem:[%s6379_s14 + $0x60] sm:$0xff] }
0x1143   :  { %v3474_v12 = vmax.f32 %v3470_v35, 0.0  ;;  %v5006_v41 = vpop.f32.mrb[48].mxu0 }
0x1144   :  { %v3479_v42 = vmin.f32 %v3475_v36, 6.0  ;;  %v3473_v43 = vadd.f32 3.0, %v5006_v41  ;;  %v3461_v44 = vpop.f32.mrb[49].mxu0  ;;  %v4398_v36 = vld [vmem:[%s6379_s14 + $0x78] sm:$0xff] }
0x1145   :  { %v3478_v29 = vmin.f32 %v3474_v12, 6.0  ;;  %v3472_v45 = vadd.f32 3.0, %v3461_v44  ;;  %v5333_v37 = vpack.c.bf16 %v4398_v36, %v4397_v20 }
0x1146   :  { %v3483_v31 = vmul.f32 %v4992_v62, %v3479_v42  ;;  %v3477_v47 = vmax.f32 %v3473_v43, 0.0 }
0x1147   :  { %v3482_v49 = vmul.f32 %v3478_v29, %v3267_v8  ;;  %v3476_v50 = vmax.f32 %v3472_v45, 0.0  ;;  %v4396_v8 = vld [vmem:[%s6379_s14 + $0x68] sm:$0xff] }
0x1148   :  { %v3481_v51 = vmin.f32 %v3477_v47, 6.0  ;;  %v3487_v58 = vmul.f32 0.16666667, %v3483_v31  ;;  %v5329_v35 = vpack.c.bf16 %v4396_v8, %v4395_v32 }
0x1149   :  { %v3486_v52 = vmul.f32 0.16666667, %v3482_v49  ;;  %v3480_v53 = vmin.f32 %v3476_v50, 6.0 }
0x114a   :  { %v3485_v60 = vmul.f32 %v5006_v41, %v3481_v51 }
0x114b   :  { %v3484_v38 = vmul.f32 %v3480_v53, %v3461_v44  ;;  %5011 = vmatprep.mubr.msk.f32.mxu1 %vm579_vm4, %v3486_v52 }
0x114c   :  { %5012 = vmatmul.mubr.msk.f32.vlgmr.msra.gmra.mrb[46].mxu1 %vm579_vm4, %v3487_v58  ;;  %v3489_v3 = vmul.f32 0.16666667, %v3485_v60 }
0x114d   :  { %v3488_v0 = vmul.f32 0.16666667, %v3484_v38  ;;  %5312 = vmatpush3.bf16.msra.mxu1 %v5309_v23 }
0x114f   :  { %5014 = vmatprep.mubr.msk.f32.mxu1 %vm579_vm4, %v3488_v0 }
0x1150   :  { %5015 = vmatmul.mubr.msk.f32.gmra.mrb[48].mxu1 %vm579_vm4, %v3489_v3  ;;  %v3982_v3 = vld [vmem:[%s6381_s16] sm:$0xff] }
0x1151   :  { %5021 = vmatprep.mubr.msk.f32.mxu1 %vm579_vm4, %v2778_v4  ;;  %v3983_v4 = vld [vmem:[%s6381_s16 + $0x8] sm:$0xff] }
0x1152   :  { %v5338_v34 = vpack.c.bf16 %v3983_v4, %v3982_v3 }
0x1154   :  { %5022 = vmatmul.mubr.msk.f32.vlgmr.msra.gmra.mrb[46].mxu1 %vm579_vm4, %v2779_v6  ;;  %v5476_v6 = vmov 0.0|0.0  }
0x1155   :  { %5024 = vmatprep.mubr.msk.f32.mxu1 %vm579_vm4, %v2780_v11  ;;  %5337 = vmatprep.subr.bf16.mxu1 %v5476_v6  ;;  %v3985_v11 = vld [vmem:[%s6381_s16 + $0x18] sm:$0xff] }
0x1156   :  { %5339 = vmatpush3.bf16.msra.mxu1 %v5338_v34 }
0x1157   :  { %5340 = vmatprep.subr.bf16.mxu1 %v5476_v6 }
0x1158   :  { %5025 = vmatmul.mubr.msk.f32.gmra.mrb[48].mxu1 %vm579_vm4, %v2781_v22  ;;  %v5341_v22 = vpack.c.bf16 %v3985_v11, %v3984_v5 }
0x1159   :  { %5071 = vmatprep.mubr.msk.f32.mxu1 %vm5477_vm6, %v5478_v9 }
0x115a   :  { %5342 = vmatpush3.bf16.msra.mxu1 %v5341_v22 }
0x115b   :  { %5343 = vmatprep.subr.bf16.mxu1 %v5476_v6 }
0x1227   :  { %v5023_v17 = vpop.f32.mrb[46].mxu1 }
0x1228   :  { %v3688_v18 = vadd.f32 %v5023_v17, %v5999_v1  ;;  %v3668_v10 = vpop.f32.mrb[47].mxu1 }
0x1229   :  { %v3687_v25 = vadd.f32 %v3668_v10, %v5997_v39 }
0x122a   :  { %v6251_v57 = vadd.f32 %v4380_v19, %v3688_v18 }
0x122b   :  { %v6249_v21 = vadd.f32 %v4380_v19, %v3687_v25  ;;  %v5026_v23 = vpop.f32.mrb[48].mxu1 }
0x122c   :  { %v3690_v24 = vadd.f32 %v5026_v23, %v6013_v33  ;;  %v3678_v26 = vpop.f32.mrb[49].mxu1  ;;  %v4394_v33 = vld [vmem:[%s6379_s14 + $0x58] sm:$0xff] }
0x122d   :  { %v3689_v27 = vadd.f32 %v3678_v26, %v6011_v56  ;;  %5035 = vmatprep.mubr.msk.f32.mxu0 %vm195_vm1, %v6249_v21  ;;  %v4393_v56 = vld [vmem:[%s6379_s14 + $0x50] sm:$0xff] }
0x122e   :  { %5036 = vmatmul.mubr.msk.f32.vlgmr.msra.gmra.mrb[50].mxu0 %vm195_vm1, %v6251_v57  ;;  %v6261_v39 = vadd.f32 %v4380_v19, %v3690_v24  ;;  %v5325_v62 = vpack.c.bf16 %v4394_v33, %v4393_v56 }
0x122f   :  { %v6259_v1 = vadd.f32 %v4380_v19, %v3689_v27  ;;  %5324 = vmatpush3.bf16.msra.mxu0 %v5321_v16 }
0x1230   :  { %5326 = vmatprep.subr.bf16.mxu0 %v5325_v62 }
0x1231   :  { %5038 = vmatprep.mubr.msk.f32.mxu0 %vm195_vm1, %v6259_v1 }
0x1232   :  { %5039 = vmatmul.mubr.msk.f32.gmra.mrb[52].mxu0 %vm195_vm1, %v6261_v39 }
0x1233   :  { %5328 = vmatpush3.bf16.msra.mxu0 %v5325_v62 }
0x1234   :  { %5330 = vmatprep.subr.bf16.mxu0 %v5329_v35 }
0x1237   :  { %5332 = vmatpush3.bf16.msra.mxu0 %v5329_v35 }
0x1238   :  { %5334 = vmatprep.subr.bf16.mxu0 %v5333_v37 }
0x123b   :  { %5336 = vmatpush3.bf16.msra.mxu0 %v5333_v37 }
0x1301   :  { %v5037_v12 = vpop.f32.mrb[50].mxu0 }
0x1302   :  { %v3800_v41 = vadd.f32 %v5037_v12, %v4386_v40  ;;  %v3794_v42 = vpop.f32.mrb[51].mxu0 }
0x1303   :  { %v3795_v43 = vadd.f32 %v4386_v40, %v3794_v42  ;;  %v4066_v42 = vld [vmem:[%s6383_s18] sm:$0xff] }
0x1304   :  { %v3814_v44 = vadd.f32 3.0, %v3800_v41 }
0x1305   :  { %v3813_v29 = vadd.f32 3.0, %v3795_v43  ;;  %v5040_v45 = vpop.f32.mrb[52].mxu0 }
0x1306   :  { %v3818_v46 = vmax.f32 %v3814_v44, 0.0  ;;  %v3810_v28 = vadd.f32 %v5040_v45, %v4386_v40  ;;  %v3804_v31 = vpop.f32.mrb[53].mxu0 }
0x1307   :  { %v3817_v47 = vmax.f32 %v3813_v29, 0.0  ;;  %v3805_v48 = vadd.f32 %v4386_v40, %v3804_v31  ;;  %v4069_v31 = vld [vmem:[%s6383_s18 + $0x18] sm:$0xff] }
0x1308   :  { %v3822_v30 = vmin.f32 %v3818_v46, 6.0  ;;  %v3816_v49 = vadd.f32 3.0, %v3810_v28 }
0x1309   :  { %v3821_v50 = vmin.f32 %v3817_v47, 6.0  ;;  %v3815_v51 = vadd.f32 3.0, %v3805_v48 }
0x130a   :  { %v3826_v52 = vmul.f32 %v3822_v30, %v3800_v41  ;;  %v3820_v53 = vmax.f32 %v3816_v49, 0.0 }
0x130b   :  { %v3825_v54 = vmul.f32 %v3821_v50, %v3795_v43  ;;  %v3819_v55 = vmax.f32 %v3815_v51, 0.0  ;;  %v4067_v43 = vld [vmem:[%s6383_s18 + $0x8] sm:$0xff] }
0x130c   :  { %v3824_v58 = vmin.f32 %v3820_v53, 6.0  ;;  %v3830_v63 = vmul.f32 0.16666667, %v3826_v52  ;;  %v5344_v46 = vpack.c.bf16 %v4067_v43, %v4066_v42 }
0x130d   :  { %v3829_v60 = vmul.f32 0.16666667, %v3825_v54  ;;  %v3823_v61 = vmin.f32 %v3819_v55, 6.0 }
0x130e   :  { %v3828_v38 = vmul.f32 %v3824_v58, %v3810_v28  ;;  %v4068_v28 = vld [vmem:[%s6383_s18 + $0x10] sm:$0xff] }
0x130f   :  { %v3827_v0 = vmul.f32 %v3823_v61, %v3805_v48  ;;  %5057 = vmatprep.mubr.msk.f32.mxu0 %vm1952_vm5, %v3829_v60  ;;  %v5347_v48 = vpack.c.bf16 %v4069_v31, %v4068_v28 }
0x1310   :  { %5058 = vmatmul.mubr.msk.f32.vlgmr.msra.gmra.mrb[54].mxu0 %vm1952_vm5, %v3830_v63  ;;  %v3832_v2 = vmul.f32 0.16666667, %v3828_v38 }
0x1311   :  { %v3831_v59 = vmul.f32 0.16666667, %v3827_v0 }
0x1313   :  { %5060 = vmatprep.mubr.msk.f32.mxu0 %vm1952_vm5, %v3831_v59 }
0x1314   :  { %5061 = vmatmul.mubr.msk.f32.gmra.mrb[56].mxu0 %vm1952_vm5, %v3832_v2 }
0x13e3   :  { %v5059_v13 = vpop.f32.mrb[54].mxu0 }
0x13e4   :  { %v3940_v7 = vadd.f32 %v5059_v13, %v6251_v57  ;;  %v3920_v15 = vpop.f32.mrb[55].mxu0 }
0x13e5   :  { %v3939_v16 = vadd.f32 %v3920_v15, %v6249_v21 }
0x13e6   :  { %v3952_v17 = vadd.f32 %v4404_v14, %v3940_v7 }
0x13e7   :  { %v3951_v18 = vadd.f32 %v4404_v14, %v3939_v16  ;;  %v5062_v19 = vpop.f32.mrb[56].mxu0 }
0x13e8   :  { %3956 = vst.msk [vmem:[#allocation2 + $0x8] sm:$0xff] %vm195_vm1, %v3952_v17  ;;  %v3960_v10 = vsel %vm195_vm1, %v3952_v17, 0.0  ;;  %v3942_v25 = vadd.f32 %v5062_v19, %v6261_v39  ;;  %v3930_v23 = vpop.f32.mrb[57].mxu0 }
0x13e9   :  { %3955 = vst.msk [vmem:[#allocation2] sm:$0xff] %vm195_vm1, %v3951_v18  ;;  %v3959_v24 = vsel %vm195_vm1, %v3951_v18, 0.0  ;;  %v3941_v26 = vadd.f32 %v3930_v23, %v6259_v1 }
0x13ea   :  { %v3961_v57 = vadd.f32 %v3960_v10, %v3959_v24  ;;  %v3954_v27 = vadd.f32 %v4404_v14, %v3942_v25 }
0x13eb   :  { %v3953_v56 = vadd.f32 %v4404_v14, %v3941_v26 }
0x13ec   :  { %v3962_v21 = vrot.slane %v3961_v57, 4  ;;  %3958 = vst.msk [vmem:[#allocation2 + $0x18] sm:$0xff] %vm195_vm1, %v3954_v27  ;;  %v3971_v33 = vsel %vm195_vm1, %v3954_v27, 0.0 }
0x13ed   :  { %3957 = vst.msk [vmem:[#allocation2 + $0x10] sm:$0xff] %vm195_vm1, %v3953_v56  ;;  %v3970_v62 = vsel %vm195_vm1, %v3953_v56, 0.0 }
0x13ee   :  { %v3963_v39 = vadd.f32 %v3962_v21, %v3961_v57  ;;  %v3972_v32 = vadd.f32 %v3971_v33, %v3970_v62 }
0x13f0   :  { %v3964_v8 = vrot.slane %v3963_v39, 2  ;;  %v3973_v35 = vrot.slane %v3972_v32, 4 }
0x13f2   :  { %v3965_v20 = vadd.f32 %v3964_v8, %v3963_v39  ;;  %v3974_v36 = vadd.f32 %v3973_v35, %v3972_v32 }
0x13f4   :  { %v3966_v37 = vrot.slane %v3965_v20, 1  ;;  %v3975_v1 = vrot.slane %v3974_v36, 2 }
0x13f6   :  { %v3976_v40 = vadd.f32 %v3975_v1, %v3974_v36  ;;  %v3967_v12 = vadd.f32 %v3966_v37, %v3965_v20 }
0x13f8   :  { %v3977_v41 = vrot.slane %v3976_v40, 1  ;;  %v3969_v29 = vmul.f32 0.0625, %v3967_v12 }
0x13fa   :  { %v3978_v44 = vadd.f32 %v3977_v41, %v3976_v40 }
0x13fc   :  { %v3979_v45 = vmul.f32 0.0625, %v3978_v44 }
0x13fe   :  { %v3981_v47 = vsel %vm3980_vm7, %v3969_v29, %v3979_v45 }
0x13ff   :  { %5072 = vmatmul.mubr.msk.f32.vlgmr.msra.gmra.mrb[50].mxu1 %vm195_vm1, %v3981_v47 }
0x1400   :  { %5345 = vmatpush3.bf16.msra.mxu1 %v5344_v46  ;;  %5082 = vmatprep.mubr.msk.f32.mxu1 %vm5477_vm6, %v5478_v9 }
0x1401   :  { %5346 = vmatprep.subr.bf16.mxu1 %v5476_v6 }
0x1404   :  { %5348 = vmatpush3.bf16.msra.mxu1 %v5347_v48 }
0x1407   :  { %5083 = vmatmul.mubr.msk.f32.vlgmr.msra.gmra.mrb[52].mxu1 %vm195_vm1, %v3981_v47 }
0x1408   :  { %5439 = shalt.err (!%p5436_p4)
}
0x1409   :  { %s5440_s27 = scalar_lea.hbm %s6385_s20, 512 }
0x140a   :  { %p5441_p5 = scmp.ne.s32.totalorder %s6385_s20, %s5440_s27  ;;  %p5444_p6 = scmp.lt.u32.totalorder %s5440_s27, %s6385_s20 }
0x140c   :  { %p5446_p7 = pnand %p5444_p6, %p5441_p5 }
0x140e   :  { %5449 = shalt.err (!%p5446_p7)
}
0x140f   :  { %s5480_s14 = smov 128   ;;  %s5481_s24 = smov 8   ;;  %v4405_v50 = vld [vmem:[%s6382_s17] ss:$0 sm:$0xff]  ;;  %vm4150_vm8 = vcmask 74752  }
0x1410   :  { %4163 = dma.vmem_to_hbm [thread:$0]  %s4158_s1, 512, %s6385_s20, [#allocation3], %s5480_s14, %s5480_s14, %s5481_s24  }
0x1411   :  { %v4408_v53 = vld [vmem:[%s6384_s19] ss:$0 sm:$0xff]  ;;  %s5482_s5 = smov [#allocation4]  }
0x1412   :  { %s4170_s15 = sshll.u32 %s5482_s5, 4  ;;  %s4171_s15 = int_to_ptr.vmem [resolvable:$true] %s4170_s15 }
0x1413   :  { %s5450_s20 = scalar_lea.vmem %s4171_s15, 32  ;;  %p5455_p9 = scmp.lt.s32.totalorder %s4171_s15, %s4171_s15 }
0x1414   :  { %p5451_p8 = scmp.ne.s32.totalorder %s4171_s15, %s5450_s20  ;;  %p5456_p10 = scmp.lt.s32.totalorder %s5450_s20, %s5450_s20 }
0x1416   :  { %p5457_p11 = por %p5456_p10, %p5455_p9 }
0x1418   :  { %p5458_p12 = pnand %p5457_p11, %p5451_p8 }
0x14d2   :  { %v4062_v30 = vpop.f32.mrb[50].mxu1 }
0x14d3   :  { %v5073_v49 = vpop.f32.mrb[51].mxu1  ;;  %v4063_v51 = vadd.f32 %v4405_v50, %v4062_v30 }
0x14da   :  { %v4136_v52 = vpop.f32.mrb[52].mxu1 }
0x14db   :  { %v4140_v54 = vadd.f32 %v4136_v52, %v4063_v51  ;;  %v5084_v55 = vpop.f32.mrb[53].mxu1 }
0x14dd   :  { %v4148_v58 = vadd.f32 %v4408_v53, %v4140_v54 }
0x14df   :  { %v4149_v60 = vmul.f32 0.5, %v4148_v58 }
0x14e1   :  { %4151 = vst.msk [vmem:[#allocation4] sm:$0x3] %vm4150_vm8, %v4149_v60 }
0x14e2   :  { %5461 = shalt.err (!%p5458_p12)
}
0x14e3   :  { %s5462_s19 = scalar_lea.hbm %s6386_s21, 32 }
0x14e4   :  { %p5463_p13 = scmp.ne.s32.totalorder %s6386_s21, %s5462_s19  ;;  %p5466_p0 = scmp.lt.u32.totalorder %s5462_s19, %s6386_s21 }
0x14e6   :  { %p5468_p1 = pnand %p5466_p0, %p5463_p13 }
0x14e8   :  { %5471 = shalt.err (!%p5468_p1)
}
0x14e9   :  { %4173 = dma.vmem_to_hbm [thread:$0]  %s4171_s15, 32, %s6386_s21, [#allocation5]  }
0x14ea   :  { %5472 = dma.done.wait [#allocation3], 512  }
0x14eb   :  { %5473 = vsyncadd [#allocation3], 4294966784 }
0x14ec   :  { %5474 = dma.done.wait [#allocation5], 32  }
0x14ed   :  { %5475 = vsyncadd [#allocation5], 4294967264 }
0x14ee   :  { %4180 = vsyncpa [#allocation3], 1 }
0x14ef   :  { %4181 = vsyncpa [#allocation5], 1 }

</bundles_post_ra>
